<compile_context>
chip_gen: v7x
topology: tpu7x:2x2x1
jax: 0.10.0
libtpu: 0.0.40
codegen_flags: <defaults>
</compile_context>

<pallas_src>
import functools
import math

import jax
import jax.numpy as jnp
from jax.experimental import pallas as pl
from jax.experimental.pallas import tpu as pltpu


LEAKY_SLOPE = 0.2
BN_EPS = 0.8
_HIDDEN = (128, 256, 512, 1024)


def _linear(x, w_ref, b_ref=None):
    # Cast the (f32) activations to bf16 only at the MXU boundary; weights are
    # already bf16; accumulate in f32.
    y = jnp.dot(
        x.astype(jnp.bfloat16), w_ref[...], preferred_element_type=jnp.float32
    )
    if b_ref is not None:
        y = y + b_ref[...]
    return y


def _leaky_relu(x):
    return jnp.where(x >= 0, x, LEAKY_SLOPE * x)


def _batch_norm(x, gamma_ref, beta_ref):
    # Training-mode BatchNorm1d with single-pass statistics:
    #   mu = E[x],  var = E[x^2] - mu^2  (biased variance), eps = 0.8.
    inv_b = 1.0 / x.shape[0]  # static batch size
    s1 = jnp.sum(x, axis=0, keepdims=True)
    s2 = jnp.sum(x * x, axis=0, keepdims=True)
    mu = s1 * inv_b
    var = jnp.maximum(s2 * inv_b - mu * mu, 0.0)  # clamp: cancellation insurance
    inv = jax.lax.rsqrt(var + BN_EPS)
    # Fold gamma/beta into a single (1, feat) scale/shift so the full-width
    # work is one multiply + one add.
    scale = inv * gamma_ref[...]
    shift = beta_ref[...] - mu * scale
    return x * scale + shift


def generator_kernel(
    z_ref,
    w1_ref, b1_ref,
    w2_ref, g2_ref, be2_ref,
    w3_ref, g3_ref, be3_ref,
    w4_ref, g4_ref, be4_ref,
    w5_ref, b5_ref,
    out_ref,
):
    x = z_ref[...].astype(jnp.float32)

    # block(IN, 128, normalize=False)
    h = _leaky_relu(_linear(x, w1_ref, b1_ref))
    # block(128, 256) / (256, 512) / (512, 1024): the Linear biases are omitted
    # because training-mode BatchNorm's mean subtraction cancels them exactly.
    h = _leaky_relu(_batch_norm(_linear(h, w2_ref), g2_ref, be2_ref))
    h = _leaky_relu(_batch_norm(_linear(h, w3_ref), g3_ref, be3_ref))
    h = _leaky_relu(_batch_norm(_linear(h, w4_ref), g4_ref, be4_ref))
    # Linear(1024, OUT_pad) + Tanh (OUT padded to a lane-dense multiple of 128).
    y = jnp.tanh(_linear(h, w5_ref, b5_ref))

    out_ref[...] = y.astype(out_ref.dtype)


def init_params(key, input_size, output_size):
    """Deterministic PyTorch-style (uniform +-1/sqrt(fan_in)) parameter init."""
    dims = [input_size, *_HIDDEN, output_size]
    params = {}
    for i in range(5):
        fan_in, fan_out = dims[i], dims[i + 1]
        key, kw, kb = jax.random.split(key, 3)
        bound = 1.0 / jnp.sqrt(jnp.float32(fan_in))
        # Stored already transposed: (in, out), so kernel does x @ W.
        params[f"w{i + 1}"] = jax.random.uniform(
            kw, (fan_in, fan_out), jnp.float32, -bound, bound
        )
        params[f"b{i + 1}"] = jax.random.uniform(
            kb, (1, fan_out), jnp.float32, -bound, bound
        )
    # BatchNorm affine params for layers 2..4 (default init: gamma=1, beta=0).
    for i, feat in ((2, 256), (3, 512), (4, 1024)):
        params[f"g{i}"] = jnp.ones((1, feat), jnp.float32)
        params[f"be{i}"] = jnp.zeros((1, feat), jnp.float32)
    return params


def prepare_params(params):
    """One-time kernel-side parameter prep (call ONCE, outside the hot loop).

    * Weights cast to bf16 (weight-streaming-bound kernel -> half the HBM bytes).
    * w5/b5 padded to a lane-dense multiple of 128 (unmasked output stores).
    * Linear biases b2/b3/b4 dropped: a per-feature constant added before
      training-mode BatchNorm is exactly cancelled by the mean subtraction.
    * Biases / gamma / beta kept in f32 (tiny, used on the VPU path).
    """
    out_size = params["b5"].shape[-1]
    out_pad = ((out_size + 127) // 128) * 128
    prep = {
        "w1": params["w1"].astype(jnp.bfloat16),
        "b1": params["b1"],
        "w2": params["w2"].astype(jnp.bfloat16),
        "g2": params["g2"], "be2": params["be2"],
        "w3": params["w3"].astype(jnp.bfloat16),
        "g3": params["g3"], "be3": params["be3"],
        "w4": params["w4"].astype(jnp.bfloat16),
        "g4": params["g4"], "be4": params["be4"],
        "w5": jnp.pad(
            params["w5"].astype(jnp.bfloat16), ((0, 0), (0, out_pad - out_size))
        ),
        "b5": jnp.pad(params["b5"], ((0, 0), (0, out_pad - out_size))),
    }
    return jax.tree_util.tree_map(jax.block_until_ready, prep)


@functools.partial(jax.jit, static_argnames=("signal_shape",))
def generator_forward(z, prep, signal_shape):
    """Forward pass using prepared (bf16, padded) params — no per-call weight prep."""
    batch, in_size = z.shape
    out_size = int(math.prod(signal_shape))
    out_pad = prep["b5"].shape[-1]

    dims = (in_size, *_HIDDEN, out_pad)
    mm_elems = sum(dims[i] * dims[i + 1] for i in range(5))
    flops = 2 * batch * mm_elems
    weight_bytes = 2 * mm_elems  # bf16, streamed once per call
    param_bytes = 4 * (dims[1] + out_pad + 2 * (256 + 512 + 1024))
    io_bytes = 4 * batch * (in_size + out_pad)
    cost = pl.CostEstimate(
        flops=flops,
        transcendentals=batch * out_pad + 256 + 512 + 1024,  # tanh + rsqrt
        bytes_accessed=weight_bytes + param_bytes + io_bytes,
    )

    flat = pl.pallas_call(
        generator_kernel,
        out_shape=jax.ShapeDtypeStruct((batch, out_pad), jnp.float32),
        compiler_params=pltpu.CompilerParams(vmem_limit_bytes=8 << 20),
        cost_estimate=cost,
    )(
        z,
        prep["w1"], prep["b1"],
        prep["w2"], prep["g2"], prep["be2"],
        prep["w3"], prep["g3"], prep["be3"],
        prep["w4"], prep["g4"], prep["be4"],
        prep["w5"], prep["b5"],
    )

    # signal.view(signal.size(0), *self.signal_shape)  — glue reshape (drop pad).
    return flat[:, :out_size].reshape((batch,) + tuple(signal_shape))


def reference_forward(z, params):
    """Pure-JAX reference mirroring the bf16-weight matmul path (incl. biases)."""

    def mm(x, w):
        return jnp.dot(
            x.astype(jnp.bfloat16),
            w.astype(jnp.bfloat16),
            preferred_element_type=jnp.float32,
        )

    def leaky(x):
        return jnp.where(x >= 0, x, LEAKY_SLOPE * x)

    def bn(x, g, b):
        mu = jnp.mean(x, axis=0, keepdims=True)
        var = jnp.mean((x - mu) ** 2, axis=0, keepdims=True)
        return (x - mu) / jnp.sqrt(var + BN_EPS) * g + b

    h = leaky(mm(z, params["w1"]) + params["b1"])
    h = leaky(bn(mm(h, params["w2"]) + params["b2"], params["g2"], params["be2"]))
    h = leaky(bn(mm(h, params["w3"]) + params["b3"], params["g3"], params["be3"]))
    h = leaky(bn(mm(h, params["w4"]) + params["b4"], params["g4"], params["be4"]))
    return jnp.tanh(mm(h, params["w5"]) + params["b5"])


if __name__ == "__main__":
    # Small config: INPUT_SIZE=32 (latent dim), OUTPUT_SIZE=64, signal_shape=(4, 16).
    INPUT_SIZE = 32
    SIGNAL_SHAPE = (4, 16)
    OUTPUT_SIZE = SIGNAL_SHAPE[0] * SIGNAL_SHAPE[1]
    BATCH = 8

    key = jax.random.PRNGKey(0)
    kz, kp = jax.random.split(key)
    z = jax.random.normal(kz, (BATCH, INPUT_SIZE), jnp.float32)
    params = init_params(kp, INPUT_SIZE, OUTPUT_SIZE)

    # One-time weight prep (cast to bf16, pad w5/b5) — NOT per forward call.
    prep = prepare_params(params)

    out = generator_forward(z, prep, SIGNAL_SHAPE)
    out = jax.block_until_ready(out)

    assert out.shape == (BATCH,) + SIGNAL_SHAPE, out.shape

    ref = reference_forward(z, params).reshape((BATCH,) + SIGNAL_SHAPE)
    max_err = float(jnp.max(jnp.abs(out - ref)))
    assert jnp.allclose(out, ref, atol=2e-2, rtol=2e-2), max_err

    print("KERNEL_OK")
</pallas_src>

<mosaic_0001>
module attributes {stable_mosaic.version = 11 : i64} {
  func.func @generator_kernel(%arg0: memref<8x32xf32, #tpu.memory_space<vmem>>, %arg1: memref<32x128xbf16, #tpu.memory_space<vmem>>, %arg2: memref<1x128xf32, #tpu.memory_space<vmem>>, %arg3: memref<128x256xbf16, #tpu.memory_space<vmem>>, %arg4: memref<1x256xf32, #tpu.memory_space<vmem>>, %arg5: memref<1x256xf32, #tpu.memory_space<vmem>>, %arg6: memref<256x512xbf16, #tpu.memory_space<vmem>>, %arg7: memref<1x512xf32, #tpu.memory_space<vmem>>, %arg8: memref<1x512xf32, #tpu.memory_space<vmem>>, %arg9: memref<512x1024xbf16, #tpu.memory_space<vmem>>, %arg10: memref<1x1024xf32, #tpu.memory_space<vmem>>, %arg11: memref<1x1024xf32, #tpu.memory_space<vmem>>, %arg12: memref<1024x128xbf16, #tpu.memory_space<vmem>>, %arg13: memref<1x128xf32, #tpu.memory_space<vmem>>, %arg14: memref<8x128xf32, #tpu.memory_space<vmem>>) attributes {dimension_semantics = [], scalar_prefetch = 0 : i64, scratch_operands = 0 : i64, tpu.core_type = #tpu.core_type<tc>} {
    %c0 = arith.constant 0 : index
    %c0_0 = arith.constant 0 : index
    %0 = vector.load %arg0[%c0, %c0_0] : memref<8x32xf32, #tpu.memory_space<vmem>>, vector<8x32xf32>
    %1 = arith.truncf %0 : vector<8x32xf32> to vector<8x32xbf16>
    %c0_1 = arith.constant 0 : index
    %c0_2 = arith.constant 0 : index
    %2 = vector.load %arg1[%c0_1, %c0_2] : memref<32x128xbf16, #tpu.memory_space<vmem>>, vector<32x128xbf16>
    %cst = arith.constant dense<0.000000e+00> : vector<8x128xf32>
    %3 = tpu.matmul %1, %2, %cst {dimension_numbers = #tpu.dot_dimension_numbers<[1], [0], [0], [1], [0, 0, 1, 1], [], []>} : vector<8x32xbf16>, vector<32x128xbf16>, vector<8x128xf32> -> vector<8x128xf32>
    %c0_3 = arith.constant 0 : index
    %c0_4 = arith.constant 0 : index
    %4 = vector.load %arg2[%c0_3, %c0_4] : memref<1x128xf32, #tpu.memory_space<vmem>>, vector<1x128xf32>
    %5 = vector.broadcast %4 : vector<1x128xf32> to vector<8x128xf32>
    %6 = arith.addf %3, %5 : vector<8x128xf32>
    %cst_5 = arith.constant 0.000000e+00 : f32
    %7 = vector.broadcast %cst_5 : f32 to vector<8x128xf32>
    %8 = arith.cmpf oge, %6, %7 : vector<8x128xf32>
    %cst_6 = arith.constant 2.000000e-01 : f32
    %9 = vector.broadcast %cst_6 : f32 to vector<8x128xf32>
    %10 = arith.mulf %9, %6 : vector<8x128xf32>
    %11 = arith.select %8, %6, %10 : vector<8x128xi1>, vector<8x128xf32>
    %12 = arith.truncf %11 : vector<8x128xf32> to vector<8x128xbf16>
    %c0_7 = arith.constant 0 : index
    %c0_8 = arith.constant 0 : index
    %13 = vector.load %arg3[%c0_7, %c0_8] : memref<128x256xbf16, #tpu.memory_space<vmem>>, vector<128x256xbf16>
    %cst_9 = arith.constant dense<0.000000e+00> : vector<8x256xf32>
    %14 = tpu.matmul %12, %13, %cst_9 {dimension_numbers = #tpu.dot_dimension_numbers<[1], [0], [0], [1], [0, 0, 1, 1], [], []>} : vector<8x128xbf16>, vector<128x256xbf16>, vector<8x256xf32> -> vector<8x256xf32>
    %cst_10 = arith.constant dense<0.000000e+00> : vector<256xf32>
    %15 = vector.multi_reduction <add>, %14, %cst_10 [0] : vector<8x256xf32> to vector<256xf32>
    %16 = vector.shape_cast %15 : vector<256xf32> to vector<1x256xf32>
    %17 = arith.mulf %14, %14 : vector<8x256xf32>
    %cst_11 = arith.constant dense<0.000000e+00> : vector<256xf32>
    %18 = vector.multi_reduction <add>, %17, %cst_11 [0] : vector<8x256xf32> to vector<256xf32>
    %19 = vector.shape_cast %18 : vector<256xf32> to vector<1x256xf32>
    %cst_12 = arith.constant 1.250000e-01 : f32
    %20 = vector.broadcast %cst_12 : f32 to vector<1x256xf32>
    %21 = arith.mulf %16, %20 : vector<1x256xf32>
    %cst_13 = arith.constant 1.250000e-01 : f32
    %22 = vector.broadcast %cst_13 : f32 to vector<1x256xf32>
    %23 = arith.mulf %19, %22 : vector<1x256xf32>
    %24 = arith.mulf %21, %21 : vector<1x256xf32>
    %25 = arith.subf %23, %24 : vector<1x256xf32>
    %cst_14 = arith.constant 0.000000e+00 : f32
    %26 = vector.broadcast %cst_14 : f32 to vector<1x256xf32>
    %27 = arith.maximumf %25, %26 : vector<1x256xf32>
    %cst_15 = arith.constant 8.000000e-01 : f32
    %28 = vector.broadcast %cst_15 : f32 to vector<1x256xf32>
    %29 = arith.addf %27, %28 : vector<1x256xf32>
    %30 = math.rsqrt %29 : vector<1x256xf32>
    %c0_16 = arith.constant 0 : index
    %c0_17 = arith.constant 0 : index
    %31 = vector.load %arg4[%c0_16, %c0_17] : memref<1x256xf32, #tpu.memory_space<vmem>>, vector<1x256xf32>
    %32 = arith.mulf %30, %31 : vector<1x256xf32>
    %c0_18 = arith.constant 0 : index
    %c0_19 = arith.constant 0 : index
    %33 = vector.load %arg5[%c0_18, %c0_19] : memref<1x256xf32, #tpu.memory_space<vmem>>, vector<1x256xf32>
    %34 = arith.mulf %21, %32 : vector<1x256xf32>
    %35 = arith.subf %33, %34 : vector<1x256xf32>
    %36 = vector.broadcast %32 : vector<1x256xf32> to vector<8x256xf32>
    %37 = arith.mulf %14, %36 : vector<8x256xf32>
    %38 = vector.broadcast %35 : vector<1x256xf32> to vector<8x256xf32>
    %39 = arith.addf %37, %38 : vector<8x256xf32>
    %cst_20 = arith.constant 0.000000e+00 : f32
    %40 = vector.broadcast %cst_20 : f32 to vector<8x256xf32>
    %41 = arith.cmpf oge, %39, %40 : vector<8x256xf32>
    %cst_21 = arith.constant 2.000000e-01 : f32
    %42 = vector.broadcast %cst_21 : f32 to vector<8x256xf32>
    %43 = arith.mulf %42, %39 : vector<8x256xf32>
    %44 = arith.select %41, %39, %43 : vector<8x256xi1>, vector<8x256xf32>
    %45 = arith.truncf %44 : vector<8x256xf32> to vector<8x256xbf16>
    %c0_22 = arith.constant 0 : index
    %c0_23 = arith.constant 0 : index
    %46 = vector.load %arg6[%c0_22, %c0_23] : memref<256x512xbf16, #tpu.memory_space<vmem>>, vector<256x512xbf16>
    %cst_24 = arith.constant dense<0.000000e+00> : vector<8x512xf32>
    %47 = tpu.matmul %45, %46, %cst_24 {dimension_numbers = #tpu.dot_dimension_numbers<[1], [0], [0], [1], [0, 0, 1, 1], [], []>} : vector<8x256xbf16>, vector<256x512xbf16>, vector<8x512xf32> -> vector<8x512xf32>
    %cst_25 = arith.constant dense<0.000000e+00> : vector<512xf32>
    %48 = vector.multi_reduction <add>, %47, %cst_25 [0] : vector<8x512xf32> to vector<512xf32>
    %49 = vector.shape_cast %48 : vector<512xf32> to vector<1x512xf32>
    %50 = arith.mulf %47, %47 : vector<8x512xf32>
    %cst_26 = arith.constant dense<0.000000e+00> : vector<512xf32>
    %51 = vector.multi_reduction <add>, %50, %cst_26 [0] : vector<8x512xf32> to vector<512xf32>
    %52 = vector.shape_cast %51 : vector<512xf32> to vector<1x512xf32>
    %cst_27 = arith.constant 1.250000e-01 : f32
    %53 = vector.broadcast %cst_27 : f32 to vector<1x512xf32>
    %54 = arith.mulf %49, %53 : vector<1x512xf32>
    %cst_28 = arith.constant 1.250000e-01 : f32
    %55 = vector.broadcast %cst_28 : f32 to vector<1x512xf32>
    %56 = arith.mulf %52, %55 : vector<1x512xf32>
    %57 = arith.mulf %54, %54 : vector<1x512xf32>
    %58 = arith.subf %56, %57 : vector<1x512xf32>
    %cst_29 = arith.constant 0.000000e+00 : f32
    %59 = vector.broadcast %cst_29 : f32 to vector<1x512xf32>
    %60 = arith.maximumf %58, %59 : vector<1x512xf32>
    %cst_30 = arith.constant 8.000000e-01 : f32
    %61 = vector.broadcast %cst_30 : f32 to vector<1x512xf32>
    %62 = arith.addf %60, %61 : vector<1x512xf32>
    %63 = math.rsqrt %62 : vector<1x512xf32>
    %c0_31 = arith.constant 0 : index
    %c0_32 = arith.constant 0 : index
    %64 = vector.load %arg7[%c0_31, %c0_32] : memref<1x512xf32, #tpu.memory_space<vmem>>, vector<1x512xf32>
    %65 = arith.mulf %63, %64 : vector<1x512xf32>
    %c0_33 = arith.constant 0 : index
    %c0_34 = arith.constant 0 : index
    %66 = vector.load %arg8[%c0_33, %c0_34] : memref<1x512xf32, #tpu.memory_space<vmem>>, vector<1x512xf32>
    %67 = arith.mulf %54, %65 : vector<1x512xf32>
    %68 = arith.subf %66, %67 : vector<1x512xf32>
    %69 = vector.broadcast %65 : vector<1x512xf32> to vector<8x512xf32>
    %70 = arith.mulf %47, %69 : vector<8x512xf32>
    %71 = vector.broadcast %68 : vector<1x512xf32> to vector<8x512xf32>
    %72 = arith.addf %70, %71 : vector<8x512xf32>
    %cst_35 = arith.constant 0.000000e+00 : f32
    %73 = vector.broadcast %cst_35 : f32 to vector<8x512xf32>
    %74 = arith.cmpf oge, %72, %73 : vector<8x512xf32>
    %cst_36 = arith.constant 2.000000e-01 : f32
    %75 = vector.broadcast %cst_36 : f32 to vector<8x512xf32>
    %76 = arith.mulf %75, %72 : vector<8x512xf32>
    %77 = arith.select %74, %72, %76 : vector<8x512xi1>, vector<8x512xf32>
    %78 = arith.truncf %77 : vector<8x512xf32> to vector<8x512xbf16>
    %c0_37 = arith.constant 0 : index
    %c0_38 = arith.constant 0 : index
    %79 = vector.load %arg9[%c0_37, %c0_38] : memref<512x1024xbf16, #tpu.memory_space<vmem>>, vector<512x1024xbf16>
    %cst_39 = arith.constant dense<0.000000e+00> : vector<8x1024xf32>
    %80 = tpu.matmul %78, %79, %cst_39 {dimension_numbers = #tpu.dot_dimension_numbers<[1], [0], [0], [1], [0, 0, 1, 1], [], []>} : vector<8x512xbf16>, vector<512x1024xbf16>, vector<8x1024xf32> -> vector<8x1024xf32>
    %cst_40 = arith.constant dense<0.000000e+00> : vector<1024xf32>
    %81 = vector.multi_reduction <add>, %80, %cst_40 [0] : vector<8x1024xf32> to vector<1024xf32>
    %82 = vector.shape_cast %81 : vector<1024xf32> to vector<1x1024xf32>
    %83 = arith.mulf %80, %80 : vector<8x1024xf32>
    %cst_41 = arith.constant dense<0.000000e+00> : vector<1024xf32>
    %84 = vector.multi_reduction <add>, %83, %cst_41 [0] : vector<8x1024xf32> to vector<1024xf32>
    %85 = vector.shape_cast %84 : vector<1024xf32> to vector<1x1024xf32>
    %cst_42 = arith.constant 1.250000e-01 : f32
    %86 = vector.broadcast %cst_42 : f32 to vector<1x1024xf32>
    %87 = arith.mulf %82, %86 : vector<1x1024xf32>
    %cst_43 = arith.constant 1.250000e-01 : f32
    %88 = vector.broadcast %cst_43 : f32 to vector<1x1024xf32>
    %89 = arith.mulf %85, %88 : vector<1x1024xf32>
    %90 = arith.mulf %87, %87 : vector<1x1024xf32>
    %91 = arith.subf %89, %90 : vector<1x1024xf32>
    %cst_44 = arith.constant 0.000000e+00 : f32
    %92 = vector.broadcast %cst_44 : f32 to vector<1x1024xf32>
    %93 = arith.maximumf %91, %92 : vector<1x1024xf32>
    %cst_45 = arith.constant 8.000000e-01 : f32
    %94 = vector.broadcast %cst_45 : f32 to vector<1x1024xf32>
    %95 = arith.addf %93, %94 : vector<1x1024xf32>
    %96 = math.rsqrt %95 : vector<1x1024xf32>
    %c0_46 = arith.constant 0 : index
    %c0_47 = arith.constant 0 : index
    %97 = vector.load %arg10[%c0_46, %c0_47] : memref<1x1024xf32, #tpu.memory_space<vmem>>, vector<1x1024xf32>
    %98 = arith.mulf %96, %97 : vector<1x1024xf32>
    %c0_48 = arith.constant 0 : index
    %c0_49 = arith.constant 0 : index
    %99 = vector.load %arg11[%c0_48, %c0_49] : memref<1x1024xf32, #tpu.memory_space<vmem>>, vector<1x1024xf32>
    %100 = arith.mulf %87, %98 : vector<1x1024xf32>
    %101 = arith.subf %99, %100 : vector<1x1024xf32>
    %102 = vector.broadcast %98 : vector<1x1024xf32> to vector<8x1024xf32>
    %103 = arith.mulf %80, %102 : vector<8x1024xf32>
    %104 = vector.broadcast %101 : vector<1x1024xf32> to vector<8x1024xf32>
    %105 = arith.addf %103, %104 : vector<8x1024xf32>
    %cst_50 = arith.constant 0.000000e+00 : f32
    %106 = vector.broadcast %cst_50 : f32 to vector<8x1024xf32>
    %107 = arith.cmpf oge, %105, %106 : vector<8x1024xf32>
    %cst_51 = arith.constant 2.000000e-01 : f32
    %108 = vector.broadcast %cst_51 : f32 to vector<8x1024xf32>
    %109 = arith.mulf %108, %105 : vector<8x1024xf32>
    %110 = arith.select %107, %105, %109 : vector<8x1024xi1>, vector<8x1024xf32>
    %111 = arith.truncf %110 : vector<8x1024xf32> to vector<8x1024xbf16>
    %c0_52 = arith.constant 0 : index
    %c0_53 = arith.constant 0 : index
    %112 = vector.load %arg12[%c0_52, %c0_53] : memref<1024x128xbf16, #tpu.memory_space<vmem>>, vector<1024x128xbf16>
    %cst_54 = arith.constant dense<0.000000e+00> : vector<8x128xf32>
    %113 = tpu.matmul %111, %112, %cst_54 {dimension_numbers = #tpu.dot_dimension_numbers<[1], [0], [0], [1], [0, 0, 1, 1], [], []>} : vector<8x1024xbf16>, vector<1024x128xbf16>, vector<8x128xf32> -> vector<8x128xf32>
    %c0_55 = arith.constant 0 : index
    %c0_56 = arith.constant 0 : index
    %114 = vector.load %arg13[%c0_55, %c0_56] : memref<1x128xf32, #tpu.memory_space<vmem>>, vector<1x128xf32>
    %115 = vector.broadcast %114 : vector<1x128xf32> to vector<8x128xf32>
    %116 = arith.addf %113, %115 : vector<8x128xf32>
    %117 = math.tanh %116 : vector<8x128xf32>
    %c0_57 = arith.constant 0 : index
    %c0_58 = arith.constant 0 : index
    %118 = vector.load %arg14[%c0_57, %c0_58] : memref<8x128xf32, #tpu.memory_space<vmem>>, vector<8x128xf32>
    tpu.vector_store %arg14[%c0_57, %c0_58], %117 {strides = array<i32>} : memref<8x128xf32, #tpu.memory_space<vmem>>, vector<8x128xf32>,
    return
  }
}

</mosaic_0001>

<bundles_post_ra>
// kernel: generator_forward.1
= control target key start
LH: loop header
LB: loop body
LE: loop exit
PB: predicated region body
PF: predicated region fallthrough
CT: control target
= control target key end

     0   :  { %19 = vsyncpa [#allocation3], 0  ;;  %s5630_s0 = inlined_call_operand.hbm [shape: f32[8,32], index: 0, kind: input, shape index: {}]   ;;  %s5631_s1 = inlined_call_operand.vmem [shape: bf16[32,128], index: 1, kind: input, shape index: {}]   ;;  %s5632_s2 = inlined_call_operand.hbm [shape: f32[1,128], index: 2, kind: input, shape index: {}]   ;;  %s5633_s3 = inlined_call_operand.hbm [shape: bf16[128,256], index: 3, kind: input, shape index: {}]   ;;  %s5634_s4 = inlined_call_operand.vmem [shape: f32[1,256], index: 4, kind: input, shape index: {}]   ;;  %s5635_s5 = inlined_call_operand.hbm [shape: f32[1,256], index: 5, kind: input, shape index: {}]   ;;  %s5636_s6 = inlined_call_operand.hbm [shape: bf16[256,512], index: 6, kind: input, shape index: {}]   ;;  %s5637_s7 = inlined_call_operand.vmem [shape: f32[1,512], index: 7, kind: input, shape index: {}]   ;;  %s5638_s8 = inlined_call_operand.hbm [shape: f32[1,512], index: 8, kind: input, shape index: {}]   ;;  %s5639_s9 = inlined_call_operand.hbm [shape: bf16[512,1024], index: 9, kind: input, shape index: {}]   ;;  %s5640_s10 = inlined_call_operand.vmem [shape: f32[1,1024], index: 10, kind: input, shape index: {}]   ;;  %s5641_s11 = inlined_call_operand.hbm [shape: f32[1,1024], index: 11, kind: input, shape index: {}]   ;;  %s5642_s12 = inlined_call_operand.hbm [shape: bf16[1024,128], index: 12, kind: input, shape index: {}]   ;;  %s5643_s13 = inlined_call_operand.hbm [shape: f32[1,128], index: 13, kind: input, shape index: {}]   ;;  %s5644_s14 = inlined_call_operand.vmem [shape: f32[8,128], index: 14, kind: output, shape index: {}]  }
   0x1   :  { %20 = vsyncpa [#allocation5], 0 }
   0x2   :  { %21 = vsyncpa [#allocation8], 0 }
   0x3   :  { %22 = vsyncpa [#allocation11], 0 }
   0x4   :  { %23 = vsyncpa [#allocation14], 0 }
   0x5   :  { %24 = vsyncpa [#allocation17], 0  ;;  %s5101_s29 = smov [#allocation4]   ;;  %s5102_s15 = smov [#allocation7]  }
   0x6   :  { %s43_s30 = sshll.u32 %s5101_s29, 4  ;;  %s67_s16 = sshll.u32 %s5102_s15, 4  ;;  %s44_s30 = int_to_ptr.vmem [resolvable:$true] %s43_s30  ;;  %s68_s16 = int_to_ptr.vmem [resolvable:$true] %s67_s16 }
   0x7   :  { %s4869_s19 = scalar_lea.hbm %s5632_s2, 16 }
   0x8   :  { %p4870_p0 = scmp.ne.s32.totalorder %s5632_s2, %s4869_s19  ;;  %p4873_p1 = scmp.lt.u32.totalorder %s4869_s19, %s5632_s2 }
   0xa   :  { %p4875_p2 = pnand %p4873_p1, %p4870_p0 }
   0xc   :  { %4878 = shalt.err (!%p4875_p2)
}
   0xd   :  { %s4879_s24 = scalar_lea.vmem %s44_s30, 16  ;;  %s4883_s25 = scalar_lea.vmem %s44_s30, 32 }
   0xe   :  { %p4880_p3 = scmp.ne.s32.totalorder %s44_s30, %s4879_s24  ;;  %p4884_p4 = scmp.lt.s32.totalorder %s44_s30, %s44_s30 }
   0xf   :  { %p4885_p5 = scmp.lt.s32.totalorder %s4883_s25, %s4879_s24 }
  0x11   :  { %p4886_p6 = por %p4885_p5, %p4884_p4 }
  0x13   :  { %p4887_p7 = pnand %p4886_p6, %p4880_p3 }
  0x15   :  { %4890 = shalt.err (!%p4887_p7)
}
  0x16   :  { %46 = dma.hbm_to_vmem [thread:$0]  %s5632_s2, 16, %s44_s30, [#allocation5]  }
  0x17   :  { %s4891_s15 = scalar_lea.hbm %s5635_s5, 32 }
  0x18   :  { %p4892_p8 = scmp.ne.s32.totalorder %s5635_s5, %s4891_s15  ;;  %p4895_p9 = scmp.lt.u32.totalorder %s4891_s15, %s5635_s5 }
  0x1a   :  { %p4897_p10 = pnand %p4895_p9, %p4892_p8 }
  0x1c   :  { %4900 = shalt.err (!%p4897_p10)
}
  0x1d   :  { %s4901_s21 = scalar_lea.vmem %s68_s16, 32  ;;  %p4906_p12 = scmp.lt.s32.totalorder %s68_s16, %s68_s16 }
  0x1e   :  { %p4902_p11 = scmp.ne.s32.totalorder %s68_s16, %s4901_s21  ;;  %p4907_p13 = scmp.lt.s32.totalorder %s4901_s21, %s4901_s21 }
  0x20   :  { %p4908_p0 = por %p4907_p13, %p4906_p12 }
  0x22   :  { %p4909_p1 = pnand %p4908_p0, %p4902_p11 }
  0x24   :  { %4912 = shalt.err (!%p4909_p1)
}
  0x25   :  { %70 = dma.hbm_to_vmem [thread:$0]  %s5635_s5, 32, %s68_s16, [#allocation8]  }
  0x26   :  { %s5103_s22 = smov [#allocation10]   ;;  %s5104_s24 = smov [#allocation13]  }
  0x27   :  { %s91_s23 = sshll.u32 %s5103_s22, 4  ;;  %s115_s25 = sshll.u32 %s5104_s24, 4  ;;  %s92_s23 = int_to_ptr.vmem [resolvable:$true] %s91_s23  ;;  %s116_s25 = int_to_ptr.vmem [resolvable:$true] %s115_s25 }
  0x28   :  { %s4913_s28 = scalar_lea.hbm %s5638_s8, 64 }
  0x29   :  { %p4914_p2 = scmp.ne.s32.totalorder %s5638_s8, %s4913_s28  ;;  %p4917_p3 = scmp.lt.u32.totalorder %s4913_s28, %s5638_s8 }
  0x2b   :  { %p4919_p4 = pnand %p4917_p3, %p4914_p2 }
  0x2d   :  { %4922 = shalt.err (!%p4919_p4)
}
  0x2e   :  { %s4923_s5 = scalar_lea.vmem %s92_s23, 64  ;;  %p4928_p6 = scmp.lt.s32.totalorder %s92_s23, %s92_s23 }
  0x2f   :  { %p4924_p5 = scmp.ne.s32.totalorder %s92_s23, %s4923_s5  ;;  %p4929_p7 = scmp.lt.s32.totalorder %s4923_s5, %s4923_s5 }
  0x31   :  { %p4930_p8 = por %p4929_p7, %p4928_p6 }
  0x33   :  { %p4931_p9 = pnand %p4930_p8, %p4924_p5 }
  0x35   :  { %4934 = shalt.err (!%p4931_p9)
}
  0x36   :  { %94 = dma.hbm_to_vmem [thread:$0]  %s5638_s8, 64, %s92_s23, [#allocation11]  }
  0x37   :  { %s4935_s2 = scalar_lea.hbm %s5641_s11, 128 }
  0x38   :  { %p4936_p10 = scmp.ne.s32.totalorder %s5641_s11, %s4935_s2  ;;  %p4939_p11 = scmp.lt.u32.totalorder %s4935_s2, %s5641_s11 }
  0x3a   :  { %p4941_p12 = pnand %p4939_p11, %p4936_p10 }
  0x3c   :  { %4944 = shalt.err (!%p4941_p12)
}
  0x3d   :  { %s4945_s27 = scalar_lea.vmem %s116_s25, 128  ;;  %p4950_p0 = scmp.lt.s32.totalorder %s116_s25, %s116_s25 }
  0x3e   :  { %p4946_p13 = scmp.ne.s32.totalorder %s116_s25, %s4945_s27  ;;  %p4951_p1 = scmp.lt.s32.totalorder %s4945_s27, %s4945_s27 }
  0x40   :  { %p4952_p2 = por %p4951_p1, %p4950_p0 }
  0x42   :  { %p4953_p3 = pnand %p4952_p2, %p4946_p13 }
  0x44   :  { %4956 = shalt.err (!%p4953_p3)
}
  0x45   :  { %118 = dma.hbm_to_vmem [thread:$0]  %s5641_s11, 128, %s116_s25, [#allocation14]  }
  0x46   :  { %s5105_s28 = smov [#allocation2]   ;;  %s5106_s15 = smov [#allocation6]  }
  0x47   :  { %s31_s29 = sshll.u32 %s5105_s28, 4  ;;  %s52_s17 = sshll.u32 %s5106_s15, 4  ;;  %s32_s29 = int_to_ptr.vmem [resolvable:$true] %s31_s29  ;;  %s5246_s17 = int_to_ptr.vmem [resolvable:$true] %s52_s17 }
  0x48   :  { %s4957_s16 = scalar_lea.hbm %s5630_s0, 128 }
  0x49   :  { %p4958_p4 = scmp.ne.s32.totalorder %s5630_s0, %s4957_s16  ;;  %p4961_p5 = scmp.lt.u32.totalorder %s4957_s16, %s5630_s0 }
  0x4b   :  { %p4963_p6 = pnand %p4961_p5, %p4958_p4 }
  0x4d   :  { %4966 = shalt.err (!%p4963_p6)
}
  0x4e   :  { %s4967_s11 = scalar_lea.vmem %s32_s29, 128  ;;  %p4972_p8 = scmp.lt.s32.totalorder %s32_s29, %s32_s29 }
  0x4f   :  { %p4968_p7 = scmp.ne.s32.totalorder %s32_s29, %s4967_s11  ;;  %p4973_p9 = scmp.lt.s32.totalorder %s4967_s11, %s4967_s11 }
  0x51   :  { %p4974_p10 = por %p4973_p9, %p4972_p8 }
  0x53   :  { %p4975_p11 = pnand %p4974_p10, %p4968_p7 }
  0x55   :  { %4978 = shalt.err (!%p4975_p11)
}
  0x56   :  { %34 = dma.hbm_to_vmem [thread:$0]  %s5630_s0, 128, %s32_s29, [#allocation3]  }
  0x57   :  { %s4979_s26 = scalar_lea.hbm %s5633_s3, 2048 }
  0x58   :  { %p4980_p12 = scmp.ne.s32.totalorder %s5633_s3, %s4979_s26  ;;  %p4983_p13 = scmp.lt.u32.totalorder %s4979_s26, %s5633_s3 }
  0x5a   :  { %p4985_p0 = pnand %p4983_p13, %p4980_p12 }
  0x5c   :  { %4988 = shalt.err (!%p4985_p0)
}
  0x5d   :  { %s4989_s15 = scalar_lea.vmem %s5246_s17, 2048  ;;  %p4994_p2 = scmp.lt.s32.totalorder %s5246_s17, %s5246_s17 }
  0x5e   :  { %p4990_p1 = scmp.ne.s32.totalorder %s5246_s17, %s4989_s15  ;;  %p4995_p3 = scmp.lt.s32.totalorder %s4989_s15, %s4989_s15 }
  0x60   :  { %p4996_p4 = por %p4995_p3, %p4994_p2 }
  0x62   :  { %p4997_p5 = pnand %p4996_p4, %p4990_p1 }
  0x64   :  { %5000 = shalt.err (!%p4997_p5)
}
  0x65   :  { %s5107_s0 = smov 128   ;;  %s5108_s29 = smov 8  }
  0x66   :  { %58 = dma.hbm_to_vmem [thread:$0]  %s5633_s3, 2048, %s5246_s17, [#allocation5], %s5107_s0, %s5107_s0, %s5108_s29  }
  0x67   :  { %s5109_s16 = smov [#allocation9]   ;;  %s5001_s2 = scalar_lea.hbm %s5636_s6, 8192 }
  0x68   :  { %s76_s19 = sshll.u32 %s5109_s16, 4  ;;  %p5002_p6 = scmp.ne.s32.totalorder %s5636_s6, %s5001_s2  ;;  %s77_s19 = int_to_ptr.vmem [resolvable:$true] %s76_s19 }
  0x69   :  { %p5005_p7 = scmp.lt.u32.totalorder %s5001_s2, %s5636_s6 }
  0x6b   :  { %p5007_p8 = pnand %p5005_p7, %p5002_p6 }
  0x6d   :  { %5010 = shalt.err (!%p5007_p8)
}
  0x6e   :  { %s5011_s24 = scalar_lea.vmem %s77_s19, 8192  ;;  %p5016_p10 = scmp.lt.s32.totalorder %s77_s19, %s77_s19 }
  0x6f   :  { %p5012_p9 = scmp.ne.s32.totalorder %s77_s19, %s5011_s24  ;;  %p5017_p11 = scmp.lt.s32.totalorder %s5011_s24, %s5011_s24 }
  0x71   :  { %p5018_p12 = por %p5017_p11, %p5016_p10 }
  0x73   :  { %p5019_p13 = pnand %p5018_p12, %p5012_p9 }
  0x75   :  { %5022 = shalt.err (!%p5019_p13)
}
  0x76   :  { %s5110_s3 = smov 256   ;;  %s5111_s17 = smov 16  }
  0x77   :  { %82 = dma.hbm_to_vmem [thread:$0]  %s5636_s6, 8192, %s77_s19, [#allocation8], %s5110_s3, %s5110_s3, %s5111_s17  }
  0x78   :  { %s5112_s8 = smov [#allocation12]   ;;  %s5023_s0 = scalar_lea.hbm %s5639_s9, 32768 }
  0x79   :  { %s100_s23 = sshll.u32 %s5112_s8, 4  ;;  %p5024_p0 = scmp.ne.s32.totalorder %s5639_s9, %s5023_s0  ;;  %s101_s23 = int_to_ptr.vmem [resolvable:$true] %s100_s23 }
  0x7a   :  { %p5027_p1 = scmp.lt.u32.totalorder %s5023_s0, %s5639_s9 }
  0x7c   :  { %p5029_p2 = pnand %p5027_p1, %p5024_p0 }
  0x7e   :  { %5032 = shalt.err (!%p5029_p2)
}
  0x7f   :  { %s5033_s20 = scalar_lea.vmem %s101_s23, 32768  ;;  %p5038_p4 = scmp.lt.s32.totalorder %s101_s23, %s101_s23 }
  0x80   :  { %p5034_p3 = scmp.ne.s32.totalorder %s101_s23, %s5033_s20  ;;  %p5039_p5 = scmp.lt.s32.totalorder %s5033_s20, %s5033_s20 }
  0x82   :  { %p5040_p6 = por %p5039_p5, %p5038_p4 }
  0x84   :  { %p5041_p7 = pnand %p5040_p6, %p5034_p3 }
  0x86   :  { %5044 = shalt.err (!%p5041_p7)
}
  0x87   :  { %s5113_s6 = smov 512   ;;  %s5114_s19 = smov 32  }
  0x88   :  { %106 = dma.hbm_to_vmem [thread:$0]  %s5639_s9, 32768, %s101_s23, [#allocation11], %s5113_s6, %s5113_s6, %s5114_s19  }
  0x89   :  { %s5115_s11 = smov [#allocation15]   ;;  %s5045_s24 = scalar_lea.hbm %s5642_s12, 8192 }
  0x8a   :  { %s124_s25 = sshll.u32 %s5115_s11, 4  ;;  %p5046_p8 = scmp.ne.s32.totalorder %s5642_s12, %s5045_s24  ;;  %s125_s25 = int_to_ptr.vmem [resolvable:$true] %s124_s25 }
  0x8b   :  { %p5049_p9 = scmp.lt.u32.totalorder %s5045_s24, %s5642_s12 }
  0x8d   :  { %p5051_p10 = pnand %p5049_p9, %p5046_p8 }
  0x8f   :  { %5054 = shalt.err (!%p5051_p10)
}
  0x90   :  { %s5055_s8 = scalar_lea.vmem %s125_s25, 8192  ;;  %p5060_p12 = scmp.lt.s32.totalorder %s125_s25, %s125_s25 }
  0x91   :  { %p5056_p11 = scmp.ne.s32.totalorder %s125_s25, %s5055_s8  ;;  %p5061_p13 = scmp.lt.s32.totalorder %s5055_s8, %s5055_s8 }
  0x93   :  { %p5062_p0 = por %p5061_p13, %p5060_p12 }
  0x95   :  { %p5063_p1 = pnand %p5062_p0, %p5056_p11 }
  0x97   :  { %5066 = shalt.err (!%p5063_p1)
}
  0x98   :  { %s5116_s9 = smov 64   ;;  %s5117_s23 = smov 4  }
  0x99   :  { %130 = dma.hbm_to_vmem [thread:$0]  %s5642_s12, 8192, %s125_s25, [#allocation14], %s5116_s9, %s5116_s9, %s5117_s23  }
  0x9a   :  { %s5118_s0 = smov [#allocation16]   ;;  %s5067_s16 = scalar_lea.hbm %s5643_s13, 16 }
  0x9b   :  { %s137_s29 = sshll.u32 %s5118_s0, 4  ;;  %p5068_p2 = scmp.ne.s32.totalorder %s5643_s13, %s5067_s16  ;;  %s138_s29 = int_to_ptr.vmem [resolvable:$true] %s137_s29 }
  0x9c   :  { %p5071_p3 = scmp.lt.u32.totalorder %s5067_s16, %s5643_s13 }
  0x9e   :  { %p5073_p4 = pnand %p5071_p3, %p5068_p2 }
  0xa0   :  { %5076 = shalt.err (!%p5073_p4)
}
  0xa1   :  { %s5077_s2 = scalar_lea.vmem %s138_s29, 16  ;;  %s5081_s12 = scalar_lea.vmem %s138_s29, 32 }
  0xa2   :  { %p5078_p5 = scmp.ne.s32.totalorder %s138_s29, %s5077_s2  ;;  %p5082_p6 = scmp.lt.s32.totalorder %s138_s29, %s138_s29 }
  0xa3   :  { %p5083_p7 = scmp.lt.s32.totalorder %s5081_s12, %s5077_s2 }
  0xa5   :  { %p5084_p8 = por %p5083_p7, %p5082_p6 }
  0xa7   :  { %p5085_p9 = pnand %p5084_p8, %p5078_p5 }
  0xa9   :  { %5088 = shalt.err (!%p5085_p9)
}
  0xaa   :  { %140 = dma.hbm_to_vmem [thread:$0]  %s5643_s13, 16, %s138_s29, [#allocation17]  }
  0xab   :  { %5089 = dma.done.wait [#allocation3], 128  }
  0xac   :  { %5090 = vsyncadd [#allocation3], 4294967168 }
  0xad   :  { %5091 = dma.done.wait [#allocation5], 2064  }
  0xae   :  { %5092 = vsyncadd [#allocation5], 4294965232 }
  0xaf   :  { %5093 = dma.done.wait [#allocation8], 8224  }
  0xb0   :  { %5094 = vsyncadd [#allocation8], 4294959072 }
  0xb1   :  { %5095 = dma.done.wait [#allocation11], 32832  }
  0xb2   :  { %5096 = vsyncadd [#allocation11], 4294934464 }
  0xb3   :  { %5097 = dma.done.wait [#allocation14], 8320  }
  0xb4   :  { %5098 = vsyncadd [#allocation14], 4294958976 }
  0xb5   :  { %5099 = dma.done.wait [#allocation17], 16  }
  0xb6   :  { %5100 = vsyncadd [#allocation17], 4294967280  ;;  %v5119_v0 = vmov 0.0   ;;  %vm5120_vm0 = vmmov 0   ;;  %v4653_v1 = vld [vmem:[%s5631_s1] sm:$0xff]   ;;  %v4654_v2 = vld [vmem:[%s5631_s1 + $0x8] sm:$0xff]  }
  0xb7   :  { %4607 = vmatprep.subr.bf16.mxu0 %v5119_v0  ;;  %4611 = vmatprep.mubr.msk.bf16.mxu0 %vm5120_vm0, %v5119_v0  ;;  %v172_v3 = vld [vmem:[#allocation2] sm:$0xff]  ;;  %v4655_v4 = vld [vmem:[#allocation6 + $0x4] ss:$8 sps:$4 sm:$0xff]   ;;  %v4657_v5 = vld [vmem:[#allocation6] ss:$8 sps:$4 sm:$0xff]   ;;  %vm197_vm1 = vcmask 261120  }
  0xb8   :  { %4608 = vmatpush3.bf16.msra.mxu0 %v4653_v1  ;;  %v4658_v6 = vld [vmem:[#allocation6 + $0x14] ss:$8 sps:$4 sm:$0xff]   ;;  %v173_v7 = vpack.c.bf16 %v172_v3, %v172_v3  ;;  %341 = vmatprep.subr.bf16.mxu1 %v4655_v4  ;;  %v4660_v8 = vld [vmem:[#allocation6 + $0x10] ss:$8 sps:$4 sm:$0xff]   ;;  %v4661_v9 = vld [vmem:[#allocation6 + $0x24] ss:$8 sps:$4 sm:$0xff]  }
  0xb9   :  { %4609 = vmatprep.subr.bf16.mxu0 %v5119_v0  ;;  %342 = vmatpush1.bf16.msra.mxu1 %v4657_v5  ;;  %v4663_v10 = vld [vmem:[#allocation6 + $0x20] ss:$8 sps:$4 sm:$0xff]   ;;  %v4664_v11 = vld [vmem:[#allocation6 + $0x34] ss:$8 sps:$4 sm:$0xff]   ;;  %v4666_v12 = vld [vmem:[#allocation6 + $0x30] ss:$8 sps:$4 sm:$0xff]  }
  0xba   :  { %343 = vmatprep.subr.bf16.mxu1 %v4658_v6  ;;  %v4667_v13 = vld [vmem:[#allocation6 + $0x44] ss:$8 sps:$4 sm:$0xff]   ;;  %v4669_v14 = vld [vmem:[#allocation6 + $0x40] ss:$8 sps:$4 sm:$0xff]   ;;  %v4670_v15 = vld [vmem:[#allocation6 + $0x54] ss:$8 sps:$4 sm:$0xff]  }
  0xbb   :  { %v4672_v16 = vld [vmem:[#allocation6 + $0x50] ss:$8 sps:$4 sm:$0xff]   ;;  %v4673_v17 = vld [vmem:[#allocation6 + $0x64] ss:$8 sps:$4 sm:$0xff]   ;;  %v4675_v18 = vld [vmem:[#allocation6 + $0x60] ss:$8 sps:$4 sm:$0xff]  }
  0xbc   :  { %4610 = vmatpush3.bf16.msra.mxu0 %v4654_v2  ;;  %v4676_v19 = vld [vmem:[#allocation6 + $0x74] ss:$8 sps:$4 sm:$0xff]   ;;  %v4678_v20 = vld [vmem:[#allocation6 + $0x70] ss:$8 sps:$4 sm:$0xff]   ;;  %v5121_v21 = vmov 0  }
  0xbd   :  { %344 = vmatpush1.bf16.msra.mxu1 %v4660_v8  ;;  %373 = vmatprep.mubr.bf16.mxu1 %v5121_v21  ;;  %v4679_v22 = vld [vmem:[#allocation9] ss:$16 sps:$4 sm:$0xff]   ;;  %v4681_v23 = vld [vmem:[#allocation9 + $0x4] ss:$16 sps:$4 sm:$0xff]   ;;  %v4684_v24 = vld [vmem:[#allocation9 + $0xc] ss:$16 sps:$4 sm:$0xff]  }
  0xbe   :  { %345 = vmatprep.subr.bf16.mxu1 %v4661_v9  ;;  %v4687_v25 = vld [vmem:[#allocation9 + $0x24] ss:$16 sps:$4 sm:$0xff]   ;;  %873 = vmatprep.subr.bf16.mxu0 %v4681_v23  ;;  %v4685_v26 = vld [vmem:[#allocation9 + $0x20] ss:$16 sps:$4 sm:$0xff]   ;;  %v4111_v27 = vld [vmem:[#allocation4] ss:$0 sm:$0xff] }
  0xbf   :  { %4612 = vmatmul.mubr.msk.bf16.vlgmr.msra.gmra.mrb[0].mxu0 %vm197_vm1, %v173_v7  ;;  %v4682_v35 = vld [vmem:[#allocation9 + $0x8] ss:$16 sps:$4 sm:$0xff]   ;;  %v4690_v37 = vld [vmem:[#allocation9 + $0x2c] ss:$16 sps:$4 sm:$0xff]   ;;  %v4693_v39 = vld [vmem:[#allocation9 + $0x44] ss:$16 sps:$4 sm:$0xff]  }
  0xc0   :  { %874 = vmatpush1.bf16.msra.mxu0 %v4679_v22  ;;  %v4688_v38 = vld [vmem:[#allocation9 + $0x28] ss:$16 sps:$4 sm:$0xff]   ;;  %v4696_v40 = vld [vmem:[#allocation9 + $0x4c] ss:$16 sps:$4 sm:$0xff]   ;;  %v4691_v41 = vld [vmem:[#allocation9 + $0x40] ss:$16 sps:$4 sm:$0xff]  }
  0xc1   :  { %346 = vmatpush1.bf16.msra.mxu1 %v4663_v10  ;;  %875 = vmatprep.subr.bf16.mxu0 %v4687_v25  ;;  %v4694_v42 = vld [vmem:[#allocation9 + $0x48] ss:$16 sps:$4 sm:$0xff]   ;;  %v4699_v43 = vld [vmem:[#allocation9 + $0x64] ss:$16 sps:$4 sm:$0xff]   ;;  %v4702_v44 = vld [vmem:[#allocation9 + $0x6c] ss:$16 sps:$4 sm:$0xff]  }
  0xc2   :  { %347 = vmatprep.subr.bf16.mxu1 %v4664_v11  ;;  %v4697_v45 = vld [vmem:[#allocation9 + $0x60] ss:$16 sps:$4 sm:$0xff]   ;;  %v4700_v46 = vld [vmem:[#allocation9 + $0x68] ss:$16 sps:$4 sm:$0xff]   ;;  %v4705_v47 = vld [vmem:[#allocation9 + $0x84] ss:$16 sps:$4 sm:$0xff]  }
  0xc3   :  { %v4708_v48 = vld [vmem:[#allocation9 + $0x8c] ss:$16 sps:$4 sm:$0xff]   ;;  %v4703_v49 = vld [vmem:[#allocation9 + $0x80] ss:$16 sps:$4 sm:$0xff]   ;;  %v4706_v50 = vld [vmem:[#allocation9 + $0x88] ss:$16 sps:$4 sm:$0xff]  }
  0xc4   :  { %876 = vmatpush1.bf16.msra.mxu0 %v4685_v26  ;;  %v4711_v51 = vld [vmem:[#allocation9 + $0xa4] ss:$16 sps:$4 sm:$0xff]   ;;  %v4714_v52 = vld [vmem:[#allocation9 + $0xac] ss:$16 sps:$4 sm:$0xff]   ;;  %v4709_v53 = vld [vmem:[#allocation9 + $0xa0] ss:$16 sps:$4 sm:$0xff]  }
  0xc5   :  { %348 = vmatpush1.bf16.msra.mxu1 %v4666_v12  ;;  %877 = vmatprep.subr.bf16.mxu0 %v4693_v39  ;;  %v4712_v54 = vld [vmem:[#allocation9 + $0xa8] ss:$16 sps:$4 sm:$0xff]   ;;  %v4717_v55 = vld [vmem:[#allocation9 + $0xc4] ss:$16 sps:$4 sm:$0xff]   ;;  %v4720_v56 = vld [vmem:[#allocation9 + $0xcc] ss:$16 sps:$4 sm:$0xff]  }
  0xc6   :  { %349 = vmatprep.subr.bf16.mxu1 %v4667_v13  ;;  %v4715_v57 = vld [vmem:[#allocation9 + $0xc0] ss:$16 sps:$4 sm:$0xff]   ;;  %v4718_v58 = vld [vmem:[#allocation9 + $0xc8] ss:$16 sps:$4 sm:$0xff]   ;;  %v4723_v59 = vld [vmem:[#allocation9 + $0xe4] ss:$16 sps:$4 sm:$0xff]  }
  0xc7   :  { %v4726_v60 = vld [vmem:[#allocation9 + $0xec] ss:$16 sps:$4 sm:$0xff]   ;;  %v4721_v61 = vld [vmem:[#allocation9 + $0xe0] ss:$16 sps:$4 sm:$0xff]   ;;  %v4724_v62 = vld [vmem:[#allocation9 + $0xe8] ss:$16 sps:$4 sm:$0xff]  }
  0xc8   :  { %878 = vmatpush1.bf16.msra.mxu0 %v4691_v41  ;;  %v4729_v63 = vld [vmem:[#allocation9 + $0x104] ss:$16 sps:$4 sm:$0xff]   ;;  %v4732_v0 = vld [vmem:[#allocation9 + $0x10c] ss:$16 sps:$4 sm:$0xff]   ;;  %v4727_v1 = vld [vmem:[#allocation9 + $0x100] ss:$16 sps:$4 sm:$0xff]  }
  0xc9   :  { %350 = vmatpush1.bf16.msra.mxu1 %v4669_v14  ;;  %879 = vmatprep.subr.bf16.mxu0 %v4699_v43  ;;  %v4730_v2 = vld [vmem:[#allocation9 + $0x108] ss:$16 sps:$4 sm:$0xff]   ;;  %v4735_v3 = vld [vmem:[#allocation9 + $0x124] ss:$16 sps:$4 sm:$0xff]   ;;  %v4738_v4 = vld [vmem:[#allocation9 + $0x12c] ss:$16 sps:$4 sm:$0xff]  }
  0xca   :  { %351 = vmatprep.subr.bf16.mxu1 %v4670_v15  ;;  %v4733_v5 = vld [vmem:[#allocation9 + $0x120] ss:$16 sps:$4 sm:$0xff]   ;;  %v4736_v6 = vld [vmem:[#allocation9 + $0x128] ss:$16 sps:$4 sm:$0xff]   ;;  %v4741_v7 = vld [vmem:[#allocation9 + $0x144] ss:$16 sps:$4 sm:$0xff]  }
  0xcb   :  { %v4744_v8 = vld [vmem:[#allocation9 + $0x14c] ss:$16 sps:$4 sm:$0xff]   ;;  %v4739_v9 = vld [vmem:[#allocation9 + $0x140] ss:$16 sps:$4 sm:$0xff]   ;;  %v4742_v10 = vld [vmem:[#allocation9 + $0x148] ss:$16 sps:$4 sm:$0xff]  }
  0xcc   :  { %880 = vmatpush1.bf16.msra.mxu0 %v4697_v45  ;;  %v4747_v11 = vld [vmem:[#allocation9 + $0x164] ss:$16 sps:$4 sm:$0xff]   ;;  %v4750_v12 = vld [vmem:[#allocation9 + $0x16c] ss:$16 sps:$4 sm:$0xff]   ;;  %v4745_v13 = vld [vmem:[#allocation9 + $0x160] ss:$16 sps:$4 sm:$0xff]  }
  0xcd   :  { %352 = vmatpush1.bf16.msra.mxu1 %v4672_v16  ;;  %881 = vmatprep.subr.bf16.mxu0 %v4705_v47  ;;  %v4748_v14 = vld [vmem:[#allocation9 + $0x168] ss:$16 sps:$4 sm:$0xff]   ;;  %v4753_v15 = vld [vmem:[#allocation9 + $0x184] ss:$16 sps:$4 sm:$0xff]   ;;  %v4756_v16 = vld [vmem:[#allocation9 + $0x18c] ss:$16 sps:$4 sm:$0xff]  }
  0xce   :  { %353 = vmatprep.subr.bf16.mxu1 %v4673_v17  ;;  %v4751_v17 = vld [vmem:[#allocation9 + $0x180] ss:$16 sps:$4 sm:$0xff]   ;;  %v4760_v22 = vld [vmem:[#allocation9 + $0x1a8] ss:$16 sps:$4 sm:$0xff]   ;;  %v4765_v23 = vld [vmem:[#allocation9 + $0x1c4] ss:$16 sps:$4 sm:$0xff]  }
  0xcf   :  { %v4757_v21 = vld [vmem:[#allocation9 + $0x1a0] ss:$16 sps:$4 sm:$0xff]   ;;  %v4766_v26 = vld [vmem:[#allocation9 + $0x1c8] ss:$16 sps:$4 sm:$0xff]  }
  0xd0   :  { %882 = vmatpush1.bf16.msra.mxu0 %v4703_v49  ;;  %v4763_v25 = vld [vmem:[#allocation9 + $0x1c0] ss:$16 sps:$4 sm:$0xff]  }
  0xd1   :  { %354 = vmatpush1.bf16.msra.mxu1 %v4675_v18  ;;  %883 = vmatprep.subr.bf16.mxu0 %v4711_v51  ;;  %v4754_v18 = vld [vmem:[#allocation9 + $0x188] ss:$16 sps:$4 sm:$0xff]  }
  0xd2   :  { %355 = vmatprep.subr.bf16.mxu1 %v4676_v19  ;;  %v4759_v19 = vld [vmem:[#allocation9 + $0x1a4] ss:$16 sps:$4 sm:$0xff]  }
  0xd4   :  { %884 = vmatpush1.bf16.msra.mxu0 %v4709_v53 }
  0xd5   :  { %356 = vmatpush1.bf16.msra.mxu1 %v4678_v20  ;;  %885 = vmatprep.subr.bf16.mxu0 %v4717_v55  ;;  %v4762_v20 = vld [vmem:[#allocation9 + $0x1ac] ss:$16 sps:$4 sm:$0xff]  }
  0xd6   :  { %914 = vmatprep.subr.bf16.mxu1 %v4684_v24  ;;  %v4768_v24 = vld [vmem:[#allocation9 + $0x1cc] ss:$16 sps:$4 sm:$0xff]  }
  0xd8   :  { %886 = vmatpush1.bf16.msra.mxu0 %v4715_v57 }
  0xd9   :  { %887 = vmatprep.subr.bf16.mxu0 %v4723_v59 }
  0xdc   :  { %888 = vmatpush1.bf16.msra.mxu0 %v4721_v61 }
  0xdd   :  { %889 = vmatprep.subr.bf16.mxu0 %v4729_v63 }
  0xe0   :  { %890 = vmatpush1.bf16.msra.mxu0 %v4727_v1 }
  0xe1   :  { %891 = vmatprep.subr.bf16.mxu0 %v4735_v3 }
  0xe4   :  { %892 = vmatpush1.bf16.msra.mxu0 %v4733_v5 }
  0xe5   :  { %893 = vmatprep.subr.bf16.mxu0 %v4741_v7 }
  0xe8   :  { %894 = vmatpush1.bf16.msra.mxu0 %v4739_v9 }
  0xe9   :  { %895 = vmatprep.subr.bf16.mxu0 %v4747_v11 }
  0xec   :  { %896 = vmatpush1.bf16.msra.mxu0 %v4745_v13 }
  0xed   :  { %897 = vmatprep.subr.bf16.mxu0 %v4753_v15 }
  0xf0   :  { %898 = vmatpush1.bf16.msra.mxu0 %v4751_v17 }
  0xf1   :  { %899 = vmatprep.subr.bf16.mxu0 %v4759_v19 }
  0xf4   :  { %900 = vmatpush1.bf16.msra.mxu0 %v4757_v21 }
  0xf5   :  { %901 = vmatprep.subr.bf16.mxu0 %v4765_v23 }
  0xf8   :  { %902 = vmatpush1.bf16.msra.mxu0 %v4763_v25 }
 0x192   :  { %v235_v28 = vpop.f32.mrb[0].mxu0 }
 0x193   :  { %v236_v29 = vadd.f32 %v4111_v27, %v235_v28  ;;  %v4613_v30 = vpop.f32.mrb[1].mxu0  ;;  %v4771_v27 = vld [vmem:[#allocation9 + $0x1e4] ss:$16 sps:$4 sm:$0xff]   ;;  %v4769_v28 = vld [vmem:[#allocation9 + $0x1e0] ss:$16 sps:$4 sm:$0xff]  }
 0x194   :  { %v238_v31 = vpop.f32.mrb[2].mxu0  ;;  %v4774_v30 = vld [vmem:[#allocation9 + $0x1ec] ss:$16 sps:$4 sm:$0xff]   ;;  %903 = vmatprep.subr.bf16.mxu0 %v4771_v27 }
 0x195   :  { %vm241_vm2 = vcmp.ge.f32.partialorder %v236_v29, 0.0  ;;  %v242_v32 = vmul.f32 0.2, %v236_v29  ;;  %v4614_v33 = vpop.f32.mrb[3].mxu0  ;;  %904 = vmatpush1.bf16.msra.mxu0 %v4769_v28  ;;  %v5331_v31 = vld [vmem:[#allocation12] sm:$0xff] }
 0x196   :  { %v5335_v33 = vld [vmem:[#allocation12 + $0x8] sm:$0xff] }
 0x197   :  { %v243_v34 = vsel %vm241_vm2, %v236_v29, %v242_v32  ;;  %v4772_v29 = vld [vmem:[#allocation9 + $0x1e8] ss:$16 sps:$4 sm:$0xff]  }
 0x198   :  { %v244_v36 = vpack.c.bf16 %v243_v34, %v243_v34  ;;  %v5333_v32 = vld [vmem:[#allocation12 + $0x20] sm:$0xff] }
 0x199   :  { %v4195_v34 = vcombine.low %v5331_v31, %v5333_v32 }
 0x19a   :  { %374 = vmatmul.mubr.bf16.vlgmr.msra.gmra.mrb[0].mxu1 %v244_v36  ;;  %v5341_v36 = vld [vmem:[#allocation12 + $0x28] sm:$0xff] }
 0x19b   :  { %915 = vmatpush1.bf16.msra.mxu1 %v4682_v35  ;;  %v4196_v35 = vcombine.high %v5331_v31, %v5333_v32  ;;  %v1181_v31 = vld [vmem:[#allocation12 + $0xc0] sm:$0xff] }
 0x19c   :  { %916 = vmatprep.subr.bf16.mxu1 %v4690_v37  ;;  %v4197_v37 = vcombine.low %v5335_v33, %v5341_v36  ;;  %v1185_v32 = vld [vmem:[#allocation12 + $0xe0] sm:$0xff] }
 0x19d   :  { %2693 = vmatprep.subr.bf16.mxu0 %v4196_v35 }
 0x19f   :  { %917 = vmatpush1.bf16.msra.mxu1 %v4688_v38  ;;  %v4198_v38 = vcombine.high %v5335_v33, %v5341_v36  ;;  %v1182_v33 = vld [vmem:[#allocation12 + $0xc8] sm:$0xff] }
 0x1a0   :  { %918 = vmatprep.subr.bf16.mxu1 %v4696_v40  ;;  %v1186_v36 = vld [vmem:[#allocation12 + $0xe8] sm:$0xff] }
 0x1a3   :  { %919 = vmatpush1.bf16.msra.mxu1 %v4694_v42 }
 0x1a4   :  { %920 = vmatprep.subr.bf16.mxu1 %v4702_v44 }
 0x1a7   :  { %921 = vmatpush1.bf16.msra.mxu1 %v4700_v46 }
 0x1a8   :  { %922 = vmatprep.subr.bf16.mxu1 %v4708_v48 }
 0x1ab   :  { %923 = vmatpush1.bf16.msra.mxu1 %v4706_v50 }
 0x1ac   :  { %924 = vmatprep.subr.bf16.mxu1 %v4714_v52 }
 0x1af   :  { %925 = vmatpush1.bf16.msra.mxu1 %v4712_v54 }
 0x1b0   :  { %926 = vmatprep.subr.bf16.mxu1 %v4720_v56 }
 0x1b3   :  { %927 = vmatpush1.bf16.msra.mxu1 %v4718_v58 }
 0x1b4   :  { %928 = vmatprep.subr.bf16.mxu1 %v4726_v60 }
 0x1b7   :  { %929 = vmatpush1.bf16.msra.mxu1 %v4724_v62 }
 0x1b8   :  { %930 = vmatprep.subr.bf16.mxu1 %v4732_v0 }
 0x1bb   :  { %931 = vmatpush1.bf16.msra.mxu1 %v4730_v2 }
 0x1bc   :  { %932 = vmatprep.subr.bf16.mxu1 %v4738_v4 }
 0x1bf   :  { %933 = vmatpush1.bf16.msra.mxu1 %v4736_v6 }
 0x1c0   :  { %934 = vmatprep.subr.bf16.mxu1 %v4744_v8 }
 0x1c3   :  { %935 = vmatpush1.bf16.msra.mxu1 %v4742_v10 }
 0x1c4   :  { %936 = vmatprep.subr.bf16.mxu1 %v4750_v12  ;;  %v424_v12 = vlaneseq }
 0x1c6   :  { %v5359_v17 = vshrl.u32 %v424_v12, 7  ;;  %v4222_v12 = vcombine.high %v1182_v33, %v1186_v36 }
 0x1c7   :  { %937 = vmatpush1.bf16.msra.mxu1 %v4748_v14 }
 0x1c8   :  { %938 = vmatprep.subr.bf16.mxu1 %v4756_v16  ;;  %v5362_v19 = vsub.s32 0, %v5359_v17  ;;  %v5368_v21 = vsub.s32 1, %v5359_v17 }
 0x1cb   :  { %939 = vmatpush1.bf16.msra.mxu1 %v4754_v18 }
 0x1cc   :  { %940 = vmatprep.subr.bf16.mxu1 %v4762_v20  ;;  %v422_v20 = vld [vmem:[%s5634_s4] sm:$0x3] }
 0x1cd   :  { %v431_v25 = vrot.slane %v422_v20, %v5368_v21 }
 0x1cf   :  { %941 = vmatpush1.bf16.msra.mxu1 %v4760_v22  ;;  %v5122_v22 = vmov 1966171168  }
 0x1d0   :  { %942 = vmatprep.subr.bf16.mxu1 %v4768_v24  ;;  %v443_v23 = vunpack.c.l.s4 %v5122_v22  ;;  %v427_v24 = vrot.slane %v422_v20, %v5362_v19 }
 0x1d2   :  { %v444_v27 = vunpack.c.0.s8 %v443_v23 }
 0x1d3   :  { %943 = vmatpush1.bf16.msra.mxu1 %v4766_v26 }
 0x1d4   :  { %944 = vmatprep.subr.bf16.mxu1 %v4774_v30 }
 0x1d7   :  { %945 = vmatpush1.bf16.msra.mxu1 %v4772_v29 }
 0x1d8   :  { %2775 = vmatprep.subr.bf16.mxu1 %v4198_v38 }
 0x26d   :  { %v5347_v39 = vpop.f32.mrb[0].mxu1 }
 0x26e   :  { %v382_v40 = vrot.slane %v5347_v39, 4  ;;  %v394_v41 = vmul.f32 %v5347_v39, %v5347_v39  ;;  %v5352_v42 = vpop.f32.mrb[1].mxu1 }
 0x26f   :  { %v388_v43 = vrot.slane %v5352_v42, 4  ;;  %v395_v44 = vmul.f32 %v5352_v42, %v5352_v42  ;;  %v379_v45 = vpop.f32.mrb[2].mxu1 }
 0x270   :  { %v383_v46 = vadd.f32 %v382_v40, %v5347_v39  ;;  %v396_v47 = vrot.slane %v394_v41, 4  ;;  %v380_v48 = vpop.f32.mrb[3].mxu1  ;;  %v5373_v40 = vsub.s32 %v444_v27, %v5359_v17 }
 0x271   :  { %v389_v49 = vadd.f32 %v388_v43, %v5352_v42  ;;  %v402_v50 = vrot.slane %v395_v44, 4 }
 0x272   :  { %v384_v51 = vrot.slane %v383_v46, 2  ;;  %v397_v52 = vadd.f32 %v396_v47, %v394_v41 }
 0x273   :  { %v390_v53 = vrot.slane %v389_v49, 2  ;;  %v403_v54 = vadd.f32 %v402_v50, %v395_v44  ;;  %v436_v44 = vld [vmem:[#allocation7] sm:$0x3] }
 0x274   :  { %v385_v55 = vadd.f32 %v384_v51, %v383_v46  ;;  %v398_v56 = vrot.slane %v397_v52, 2 }
 0x275   :  { %v391_v57 = vadd.f32 %v390_v53, %v389_v49  ;;  %v404_v58 = vrot.slane %v403_v54, 2 }
 0x276   :  { %v386_v59 = vrot.slane %v385_v55, 1  ;;  %v399_v60 = vadd.f32 %v398_v56, %v397_v52 }
 0x277   :  { %v392_v61 = vrot.slane %v391_v57, 1  ;;  %v405_v62 = vadd.f32 %v404_v58, %v403_v54  ;;  %v1169_v58 = vld [vmem:[#allocation12 + $0x60] sm:$0xff] }
 0x278   :  { %v387_v63 = vadd.f32 %v386_v59, %v385_v55  ;;  %v400_v0 = vrot.slane %v399_v60, 1  ;;  %v1165_v55 = vld [vmem:[#allocation12 + $0x40] sm:$0xff]  ;;  %v1166_v59 = vld [vmem:[#allocation12 + $0x48] sm:$0xff] }
 0x279   :  { %v393_v1 = vadd.f32 %v392_v61, %v391_v57  ;;  %v406_v2 = vrot.slane %v405_v62, 1 }
 0x27a   :  { %v401_v3 = vadd.f32 %v400_v0, %v399_v60  ;;  %v408_v4 = vmul.f32 0.125, %v387_v63  ;;  %v1170_v60 = vld [vmem:[#allocation12 + $0x68] sm:$0xff]  ;;  %v4204_v0 = vcombine.high %v1165_v55, %v1169_v58 }
 0x27b   :  { %v407_v5 = vadd.f32 %v406_v2, %v405_v62  ;;  %v409_v6 = vmul.f32 0.125, %v393_v1  ;;  %v4203_v1 = vcombine.low %v1165_v55, %v1169_v58  ;;  %v4205_v2 = vcombine.low %v1166_v59, %v1170_v60  ;;  %v1225_v58 = vld [vmem:[#allocation12 + $0x220] sm:$0xff] }
 0x27c   :  { %v410_v7 = vmul.f32 0.125, %v401_v3  ;;  %v412_v8 = vmul.f32 %v408_v4, %v408_v4  ;;  %v1173_v3 = vld [vmem:[#allocation12 + $0x80] sm:$0xff] }
 0x27d   :  { %v411_v9 = vmul.f32 0.125, %v407_v5  ;;  %v413_v10 = vmul.f32 %v409_v6, %v409_v6  ;;  %v1174_v5 = vld [vmem:[#allocation12 + $0x88] sm:$0xff] }
 0x27e   :  { %v414_v11 = vsub.f32 %v410_v7, %v412_v8  ;;  %v1178_v7 = vld [vmem:[#allocation12 + $0xa8] sm:$0xff] }
 0x27f   :  { %v415_v13 = vsub.f32 %v411_v9, %v413_v10  ;;  %v4213_v9 = vcombine.low %v1174_v5, %v1178_v7  ;;  %v4214_v10 = vcombine.high %v1174_v5, %v1178_v7  ;;  %v1237_v7 = vld [vmem:[#allocation12 + $0x280] sm:$0xff] }
 0x280   :  { %v416_v14 = vmax.f32 %v414_v11, 0.0  ;;  %v4221_v11 = vcombine.low %v1182_v33, %v1186_v36  ;;  %v1245_v36 = vld [vmem:[#allocation12 + $0x2c0] sm:$0xff] }
 0x281   :  { %v417_v15 = vmax.f32 %v415_v13, 0.0  ;;  %v1189_v13 = vld [vmem:[#allocation12 + $0x100] sm:$0xff] }
 0x282   :  { %v418_v16 = vadd.f32 0.8, %v416_v14  ;;  %v1193_v14 = vld [vmem:[#allocation12 + $0x120] sm:$0xff] }
 0x283   :  { %v419_v18 = vadd.f32 0.8, %v417_v15  ;;  %v1190_v15 = vld [vmem:[#allocation12 + $0x108] sm:$0xff]  ;;  %v4227_v20 = vcombine.low %v1189_v13, %v1193_v14 }
 0x284   :  { %4839 = vrsqrt.f32 %v418_v16  ;;  %v4228_v16 = vcombine.high %v1189_v13, %v1193_v14  ;;  %v1250_v13 = vld [vmem:[#allocation12 + $0x2e8] sm:$0xff] }
 0x285   :  { %4841 = vrsqrt.f32 %v419_v18  ;;  %v1194_v18 = vld [vmem:[#allocation12 + $0x128] sm:$0xff] }
 0x286   :  { %v4229_v22 = vcombine.low %v1190_v15, %v1194_v18  ;;  %v4230_v23 = vcombine.high %v1190_v15, %v1194_v18  ;;  %v1253_v18 = vld [vmem:[#allocation12 + $0x300] sm:$0xff] }
 0x28e   :  { %v4840_v26 = vpop.eup %4839 }
 0x28f   :  { %v4842_v28 = vpop.eup %4841  ;;  %v434_v29 = vmul.f32 %v4840_v26, %v427_v24  ;;  %v1197_v24 = vld [vmem:[#allocation12 + $0x140] sm:$0xff]  ;;  %v1198_v26 = vld [vmem:[#allocation12 + $0x148] sm:$0xff] }
 0x290   :  { %v435_v30 = vmul.f32 %v4842_v28, %v431_v25  ;;  %v1201_v25 = vld [vmem:[#allocation12 + $0x160] sm:$0xff]  ;;  %v1202_v28 = vld [vmem:[#allocation12 + $0x168] sm:$0xff] }
 0x291   :  { %v437_v35 = vmul.f32 %v434_v29, %v408_v4  ;;  %v461_v45 = vrot.slane %v434_v29, %v5362_v19  ;;  %v1177_v4 = vld [vmem:[#allocation12 + $0xa0] sm:$0xff]  ;;  %v4236_v27 = vcombine.high %v1197_v24, %v1201_v25  ;;  %v4235_v29 = vcombine.low %v1197_v24, %v1201_v25  ;;  %v1258_v24 = vld [vmem:[#allocation12 + $0x328] sm:$0xff] }
 0x292   :  { %v438_v38 = vmul.f32 %v435_v30, %v409_v6  ;;  %v465_v47 = vrot.slane %v435_v30, %v5362_v19  ;;  %v4212_v6 = vcombine.high %v1173_v3, %v1177_v4  ;;  %v4211_v8 = vcombine.low %v1173_v3, %v1177_v4  ;;  %v1234_v3 = vld [vmem:[#allocation12 + $0x268] sm:$0xff] }
 0x293   :  { %v466_v49 = vmul.f32 %v461_v45, %v5347_v39  ;;  %v4237_v30 = vcombine.low %v1198_v26, %v1202_v28  ;;  %v1210_v45 = vld [vmem:[#allocation12 + $0x1a8] sm:$0xff] }
 0x294   :  { %v441_v41 = vcombine.low %v437_v35, %v438_v38  ;;  %v467_v50 = vmul.f32 %v465_v47, %v5352_v42  ;;  %v4206_v42 = vcombine.high %v1166_v59, %v1170_v60  ;;  %v4238_v35 = vcombine.high %v1198_v26, %v1202_v28  ;;  %v1205_v38 = vld [vmem:[#allocation12 + $0x180] sm:$0xff]  ;;  %v1222_v59 = vld [vmem:[#allocation12 + $0x208] sm:$0xff] }
 0x295   :  { %v1261_v28 = vld [vmem:[#allocation12 + $0x340] sm:$0xff] }
 0x296   :  { %v448_v43 = vrot.slane %v441_v41, %v5373_v40  ;;  %v1209_v41 = vld [vmem:[#allocation12 + $0x1a0] sm:$0xff] }
 0x298   :  { %v455_v46 = vrot.slane %v448_v43, %v5373_v40  ;;  %v1206_v43 = vld [vmem:[#allocation12 + $0x188] sm:$0xff] }
 0x299   :  { %v4245_v47 = vcombine.low %v1206_v43, %v1210_v45 }
 0x29a   :  { %v457_v48 = vsub.f32 %v436_v44, %v455_v46  ;;  %v4244_v44 = vcombine.high %v1205_v38, %v1209_v41  ;;  %v4243_v46 = vcombine.low %v1205_v38, %v1209_v41  ;;  %v1266_v38 = vld [vmem:[#allocation12 + $0x368] sm:$0xff] }
 0x29c   :  { %v472_v51 = vrot.slane %v457_v48, %v5362_v19  ;;  %v476_v52 = vrot.slane %v457_v48, %v5368_v21  ;;  %v4246_v48 = vcombine.high %v1206_v43, %v1210_v45  ;;  %v1269_v45 = vld [vmem:[#allocation12 + $0x380] sm:$0xff] }
 0x29e   :  { %v480_v53 = vadd.f32 %v476_v52, %v467_v50  ;;  %v479_v54 = vadd.f32 %v472_v51, %v466_v49  ;;  %v1213_v49 = vld [vmem:[#allocation12 + $0x1c0] sm:$0xff]  ;;  %v1214_v51 = vld [vmem:[#allocation12 + $0x1c8] sm:$0xff] }
 0x29f   :  { %v1217_v50 = vld [vmem:[#allocation12 + $0x1e0] sm:$0xff] }
 0x2a0   :  { %vm482_vm3 = vcmp.ge.f32.partialorder %v480_v53, 0.0  ;;  %v484_v56 = vmul.f32 0.2, %v480_v53  ;;  %vm481_vm4 = vcmp.ge.f32.partialorder %v479_v54, 0.0  ;;  %v483_v57 = vmul.f32 0.2, %v479_v54 }
 0x2a1   :  { %v4252_v52 = vcombine.high %v1213_v49, %v1217_v50 }
 0x2a2   :  { %v486_v61 = vsel %vm482_vm3, %v480_v53, %v484_v56  ;;  %v485_v62 = vsel %vm481_vm4, %v479_v54, %v483_v57  ;;  %v1218_v53 = vld [vmem:[#allocation12 + $0x1e8] sm:$0xff]  ;;  %v4251_v54 = vcombine.low %v1213_v49, %v1217_v50  ;;  %v1221_v57 = vld [vmem:[#allocation12 + $0x200] sm:$0xff] }
 0x2a3   :  { %v488_v63 = vpack.c.bf16 %v486_v61, %v486_v61  ;;  %v487_v39 = vpack.c.bf16 %v485_v62, %v485_v62  ;;  %v4253_v55 = vcombine.low %v1214_v51, %v1218_v53  ;;  %v4254_v56 = vcombine.high %v1214_v51, %v1218_v53  ;;  %v1226_v61 = vld [vmem:[#allocation12 + $0x228] sm:$0xff]  ;;  %v1277_v53 = vld [vmem:[#allocation12 + $0x3c0] sm:$0xff] }
 0x2a4   :  { %v4260_v60 = vcombine.high %v1221_v57, %v1225_v58  ;;  %v4259_v62 = vcombine.low %v1221_v57, %v1225_v58  ;;  %v1274_v49 = vld [vmem:[#allocation12 + $0x3a8] sm:$0xff] }
 0x2a5   :  { %905 = vmatprep.mubr.bf16.mxu0 %v488_v63  ;;  %946 = vmatprep.mubr.bf16.mxu1 %v488_v63  ;;  %v4261_v63 = vcombine.low %v1222_v59, %v1226_v61  ;;  %v1282_v58 = vld [vmem:[#allocation12 + $0x3e8] sm:$0xff] }
 0x2a6   :  { %906 = vmatmul.mubr.bf16.vlgmr.msra.gmra.mrb[4].mxu0 %v487_v39  ;;  %947 = vmatmul.mubr.bf16.vlgmr.msra.gmra.mrb[4].mxu1 %v487_v39  ;;  %v4262_v39 = vcombine.high %v1222_v59, %v1226_v61  ;;  %v5389_v61 = vld [vmem:[#allocation12 + $0x400] sm:$0xff] }
 0x2a7   :  { %2694 = vmatpush1.bf16.msra.mxu0 %v4195_v34  ;;  %2776 = vmatpush1.bf16.msra.mxu1 %v4197_v37  ;;  %v4220_v34 = vcombine.high %v1181_v31, %v1185_v32  ;;  %v4219_v37 = vcombine.low %v1181_v31, %v1185_v32  ;;  %v1242_v31 = vld [vmem:[#allocation12 + $0x2a8] sm:$0xff] }
 0x2a8   :  { %2695 = vmatprep.subr.bf16.mxu0 %v4204_v0  ;;  %2777 = vmatprep.subr.bf16.mxu1 %v4206_v42  ;;  %v1229_v0 = vld [vmem:[#allocation12 + $0x240] sm:$0xff] }
 0x2a9   :  { %v1233_v42 = vld [vmem:[#allocation12 + $0x260] sm:$0xff] }
 0x2aa   :  { %v4267_v4 = vcombine.low %v1229_v0, %v1233_v42 }
 0x2ab   :  { %2696 = vmatpush1.bf16.msra.mxu0 %v4203_v1  ;;  %2778 = vmatpush1.bf16.msra.mxu1 %v4205_v2  ;;  %v1230_v1 = vld [vmem:[#allocation12 + $0x248] sm:$0xff]  ;;  %v4268_v2 = vcombine.high %v1229_v0, %v1233_v42 }
 0x2ac   :  { %2697 = vmatprep.subr.bf16.mxu0 %v4212_v6  ;;  %2779 = vmatprep.subr.bf16.mxu1 %v4214_v10  ;;  %v4269_v5 = vcombine.low %v1230_v1, %v1234_v3  ;;  %v4270_v6 = vcombine.high %v1230_v1, %v1234_v3  ;;  %v5397_v0 = vld [vmem:[#allocation12 + $0x428] sm:$0xff] }
 0x2af   :  { %2698 = vmatpush1.bf16.msra.mxu0 %v4211_v8  ;;  %2780 = vmatpush1.bf16.msra.mxu1 %v4213_v9  ;;  %v1241_v8 = vld [vmem:[#allocation12 + $0x2a0] sm:$0xff]  ;;  %v1238_v9 = vld [vmem:[#allocation12 + $0x288] sm:$0xff] }
 0x2b0   :  { %2699 = vmatprep.subr.bf16.mxu0 %v4220_v34  ;;  %2781 = vmatprep.subr.bf16.mxu1 %v4222_v12  ;;  %v4276_v10 = vcombine.high %v1237_v7, %v1241_v8  ;;  %v4275_v32 = vcombine.low %v1237_v7, %v1241_v8  ;;  %v4277_v33 = vcombine.low %v1238_v9, %v1242_v31 }
 0x2b1   :  { %v4278_v34 = vcombine.high %v1238_v9, %v1242_v31 }
 0x2b3   :  { %2700 = vmatpush1.bf16.msra.mxu0 %v4219_v37  ;;  %2782 = vmatpush1.bf16.msra.mxu1 %v4221_v11  ;;  %v1249_v37 = vld [vmem:[#allocation12 + $0x2e0] sm:$0xff]  ;;  %v1246_v11 = vld [vmem:[#allocation12 + $0x2c8] sm:$0xff] }
 0x2b4   :  { %2701 = vmatprep.subr.bf16.mxu0 %v4228_v16  ;;  %2783 = vmatprep.subr.bf16.mxu1 %v4230_v23  ;;  %v4284_v12 = vcombine.high %v1245_v36, %v1249_v37  ;;  %v4283_v14 = vcombine.low %v1245_v36, %v1249_v37  ;;  %v4285_v15 = vcombine.low %v1246_v11, %v1250_v13 }
 0x2b5   :  { %v4286_v16 = vcombine.high %v1246_v11, %v1250_v13 }
 0x2b7   :  { %2702 = vmatpush1.bf16.msra.mxu0 %v4227_v20  ;;  %2784 = vmatpush1.bf16.msra.mxu1 %v4229_v22  ;;  %v1257_v20 = vld [vmem:[#allocation12 + $0x320] sm:$0xff]  ;;  %v1254_v22 = vld [vmem:[#allocation12 + $0x308] sm:$0xff] }
 0x2b8   :  { %2703 = vmatprep.subr.bf16.mxu0 %v4236_v27  ;;  %2785 = vmatprep.subr.bf16.mxu1 %v4238_v35  ;;  %v4292_v23 = vcombine.high %v1253_v18, %v1257_v20  ;;  %v4291_v25 = vcombine.low %v1253_v18, %v1257_v20  ;;  %v4293_v26 = vcombine.low %v1254_v22, %v1258_v24 }
 0x2b9   :  { %v4294_v27 = vcombine.high %v1254_v22, %v1258_v24 }
 0x2bb   :  { %2704 = vmatpush1.bf16.msra.mxu0 %v4235_v29  ;;  %2786 = vmatpush1.bf16.msra.mxu1 %v4237_v30  ;;  %v1265_v29 = vld [vmem:[#allocation12 + $0x360] sm:$0xff]  ;;  %v1262_v30 = vld [vmem:[#allocation12 + $0x348] sm:$0xff] }
 0x2bc   :  { %2705 = vmatprep.subr.bf16.mxu0 %v4244_v44  ;;  %2787 = vmatprep.subr.bf16.mxu1 %v4246_v48  ;;  %v4300_v35 = vcombine.high %v1261_v28, %v1265_v29  ;;  %v4299_v41 = vcombine.low %v1261_v28, %v1265_v29  ;;  %v4301_v43 = vcombine.low %v1262_v30, %v1266_v38 }
 0x2bd   :  { %v4302_v44 = vcombine.high %v1262_v30, %v1266_v38 }
 0x2bf   :  { %2706 = vmatpush1.bf16.msra.mxu0 %v4243_v46  ;;  %2788 = vmatpush1.bf16.msra.mxu1 %v4245_v47  ;;  %v1273_v46 = vld [vmem:[#allocation12 + $0x3a0] sm:$0xff]  ;;  %v1270_v47 = vld [vmem:[#allocation12 + $0x388] sm:$0xff] }
 0x2c0   :  { %2707 = vmatprep.subr.bf16.mxu0 %v4252_v52  ;;  %2789 = vmatprep.subr.bf16.mxu1 %v4254_v56  ;;  %v4308_v48 = vcombine.high %v1269_v45, %v1273_v46  ;;  %v4307_v50 = vcombine.low %v1269_v45, %v1273_v46  ;;  %v4309_v51 = vcombine.low %v1270_v47, %v1274_v49 }
 0x2c1   :  { %v4310_v52 = vcombine.high %v1270_v47, %v1274_v49 }
 0x2c3   :  { %2708 = vmatpush1.bf16.msra.mxu0 %v4251_v54  ;;  %2790 = vmatpush1.bf16.msra.mxu1 %v4253_v55  ;;  %v1281_v54 = vld [vmem:[#allocation12 + $0x3e0] sm:$0xff]  ;;  %v1278_v55 = vld [vmem:[#allocation12 + $0x3c8] sm:$0xff] }
 0x2c4   :  { %2709 = vmatprep.subr.bf16.mxu0 %v4260_v60  ;;  %2791 = vmatprep.subr.bf16.mxu1 %v4262_v39  ;;  %v4315_v56 = vcombine.low %v1277_v53, %v1281_v54  ;;  %v4316_v57 = vcombine.high %v1277_v53, %v1281_v54  ;;  %v4317_v59 = vcombine.low %v1278_v55, %v1282_v58 }
 0x2c5   :  { %v4318_v60 = vcombine.high %v1278_v55, %v1282_v58 }
 0x2c7   :  { %2710 = vmatpush1.bf16.msra.mxu0 %v4259_v62  ;;  %2792 = vmatpush1.bf16.msra.mxu1 %v4261_v63  ;;  %v5391_v62 = vld [vmem:[#allocation12 + $0x420] sm:$0xff]  ;;  %v5393_v63 = vld [vmem:[#allocation12 + $0x408] sm:$0xff] }
 0x2c8   :  { %2711 = vmatprep.subr.bf16.mxu0 %v4268_v2  ;;  %2793 = vmatprep.subr.bf16.mxu1 %v4270_v6  ;;  %v4324_v39 = vcombine.high %v5389_v61, %v5391_v62  ;;  %v4323_v42 = vcombine.low %v5389_v61, %v5391_v62  ;;  %v4325_v1 = vcombine.low %v5393_v63, %v5397_v0 }
 0x2c9   :  { %v4326_v2 = vcombine.high %v5393_v63, %v5397_v0 }
 0x2cb   :  { %2712 = vmatpush1.bf16.msra.mxu0 %v4267_v4  ;;  %2794 = vmatpush1.bf16.msra.mxu1 %v4269_v5 }
 0x2cc   :  { %2713 = vmatprep.subr.bf16.mxu0 %v4276_v10  ;;  %2795 = vmatprep.subr.bf16.mxu1 %v4278_v34 }
 0x2cf   :  { %2714 = vmatpush1.bf16.msra.mxu0 %v4275_v32  ;;  %2796 = vmatpush1.bf16.msra.mxu1 %v4277_v33 }
 0x2d0   :  { %2715 = vmatprep.subr.bf16.mxu0 %v4284_v12  ;;  %2797 = vmatprep.subr.bf16.mxu1 %v4286_v16 }
 0x2d3   :  { %2716 = vmatpush1.bf16.msra.mxu0 %v4283_v14  ;;  %2798 = vmatpush1.bf16.msra.mxu1 %v4285_v15 }
 0x2d4   :  { %2717 = vmatprep.subr.bf16.mxu0 %v4292_v23  ;;  %2799 = vmatprep.subr.bf16.mxu1 %v4294_v27 }
 0x2d7   :  { %2718 = vmatpush1.bf16.msra.mxu0 %v4291_v25  ;;  %2800 = vmatpush1.bf16.msra.mxu1 %v4293_v26 }
 0x2d8   :  { %2719 = vmatprep.subr.bf16.mxu0 %v4300_v35  ;;  %2801 = vmatprep.subr.bf16.mxu1 %v4302_v44 }
 0x2db   :  { %2720 = vmatpush1.bf16.msra.mxu0 %v4299_v41  ;;  %2802 = vmatpush1.bf16.msra.mxu1 %v4301_v43 }
 0x2dc   :  { %2721 = vmatprep.subr.bf16.mxu0 %v4308_v48  ;;  %2803 = vmatprep.subr.bf16.mxu1 %v4310_v52 }
 0x2df   :  { %2722 = vmatpush1.bf16.msra.mxu0 %v4307_v50  ;;  %2804 = vmatpush1.bf16.msra.mxu1 %v4309_v51 }
 0x2e0   :  { %2723 = vmatprep.subr.bf16.mxu0 %v4316_v57  ;;  %2805 = vmatprep.subr.bf16.mxu1 %v4318_v60 }
 0x2e3   :  { %2724 = vmatpush1.bf16.msra.mxu0 %v4315_v56  ;;  %2806 = vmatpush1.bf16.msra.mxu1 %v4317_v59 }
 0x2e4   :  { %2734 = vmatprep.subr.bf16.mxu0 %v4324_v39  ;;  %2816 = vmatprep.subr.bf16.mxu1 %v4326_v2 }
 0x379   :  { %v5405_v3 = vpop.f32.mrb[4].mxu0  ;;  %v5407_v4 = vpop.f32.mrb[4].mxu1 }
 0x37a   :  { %v955_v5 = vrot.slane %v5405_v3, 4  ;;  %v979_v6 = vmul.f32 %v5405_v3, %v5405_v3  ;;  %v967_v7 = vrot.slane %v5407_v4, 4  ;;  %v981_v8 = vmul.f32 %v5407_v4, %v5407_v4  ;;  %v5415_v9 = vpop.f32.mrb[5].mxu0  ;;  %v5417_v10 = vpop.f32.mrb[5].mxu1 }
 0x37b   :  { %v961_v31 = vrot.slane %v5415_v9, 4  ;;  %v980_v32 = vmul.f32 %v5415_v9, %v5415_v9  ;;  %v973_v33 = vrot.slane %v5417_v10, 4  ;;  %v982_v34 = vmul.f32 %v5417_v10, %v5417_v10  ;;  %v911_v36 = vpop.f32.mrb[6].mxu0  ;;  %v952_v37 = vpop.f32.mrb[6].mxu1 }
 0x37c   :  { %v956_v11 = vadd.f32 %v955_v5, %v5405_v3  ;;  %v983_v12 = vrot.slane %v979_v6, 4  ;;  %v968_v13 = vadd.f32 %v967_v7, %v5407_v4  ;;  %v995_v14 = vrot.slane %v981_v8, 4  ;;  %v912_v15 = vpop.f32.mrb[7].mxu0  ;;  %v953_v16 = vpop.f32.mrb[7].mxu1 }
 0x37d   :  { %v962_v18 = vadd.f32 %v961_v31, %v5415_v9  ;;  %v989_v20 = vrot.slane %v980_v32, 4  ;;  %v974_v22 = vadd.f32 %v973_v33, %v5417_v10  ;;  %v1001_v23 = vrot.slane %v982_v34, 4 }
 0x37e   :  { %v957_v24 = vrot.slane %v956_v11, 2  ;;  %v984_v25 = vadd.f32 %v983_v12, %v979_v6  ;;  %v969_v26 = vrot.slane %v968_v13, 2  ;;  %v996_v27 = vadd.f32 %v995_v14, %v981_v8 }
 0x37f   :  { %v963_v28 = vrot.slane %v962_v18, 2  ;;  %v990_v29 = vadd.f32 %v989_v20, %v980_v32  ;;  %v975_v30 = vrot.slane %v974_v22, 2  ;;  %v1002_v35 = vadd.f32 %v1001_v23, %v982_v34 }
 0x380   :  { %v958_v38 = vadd.f32 %v957_v24, %v956_v11  ;;  %v985_v41 = vrot.slane %v984_v25, 2  ;;  %v970_v43 = vadd.f32 %v969_v26, %v968_v13  ;;  %v997_v44 = vrot.slane %v996_v27, 2 }
 0x381   :  { %v964_v45 = vadd.f32 %v963_v28, %v962_v18  ;;  %v991_v46 = vrot.slane %v990_v29, 2  ;;  %v976_v47 = vadd.f32 %v975_v30, %v974_v22  ;;  %v1003_v48 = vrot.slane %v1002_v35, 2 }
 0x382   :  { %v959_v49 = vrot.slane %v958_v38, 1  ;;  %v986_v50 = vadd.f32 %v985_v41, %v984_v25  ;;  %v971_v51 = vrot.slane %v970_v43, 1  ;;  %v998_v52 = vadd.f32 %v997_v44, %v996_v27 }
 0x383   :  { %v965_v53 = vrot.slane %v964_v45, 1  ;;  %v992_v54 = vadd.f32 %v991_v46, %v990_v29  ;;  %v977_v55 = vrot.slane %v976_v47, 1  ;;  %v1004_v56 = vadd.f32 %v1003_v48, %v1002_v35 }
 0x384   :  { %v960_v57 = vadd.f32 %v959_v49, %v958_v38  ;;  %v987_v58 = vrot.slane %v986_v50, 1  ;;  %v972_v59 = vadd.f32 %v971_v51, %v970_v43  ;;  %v999_v60 = vrot.slane %v998_v52, 1  ;;  %v1035_v43 = vld [vmem:[%s5637_s7] sm:$0xf] }
 0x385   :  { %v966_v39 = vadd.f32 %v965_v53, %v964_v45  ;;  %v993_v2 = vrot.slane %v992_v54, 1  ;;  %v978_v5 = vadd.f32 %v977_v55, %v976_v47  ;;  %v1005_v6 = vrot.slane %v1004_v56, 1 }
 0x386   :  { %v988_v7 = vadd.f32 %v987_v58, %v986_v50  ;;  %v1007_v8 = vmul.f32 0.125, %v960_v57  ;;  %v1000_v31 = vadd.f32 %v999_v60, %v998_v52  ;;  %v1009_v32 = vmul.f32 0.125, %v972_v59 }
 0x387   :  { %v994_v33 = vadd.f32 %v993_v2, %v992_v54  ;;  %v1008_v34 = vmul.f32 0.125, %v966_v39  ;;  %v1006_v36 = vadd.f32 %v1005_v6, %v1004_v56  ;;  %v1010_v37 = vmul.f32 0.125, %v978_v5 }
 0x388   :  { %v1011_v11 = vmul.f32 0.125, %v988_v7  ;;  %v1015_v12 = vmul.f32 %v1007_v8, %v1007_v8  ;;  %v1013_v13 = vmul.f32 0.125, %v1000_v31  ;;  %v1017_v14 = vmul.f32 %v1009_v32, %v1009_v32 }
 0x389   :  { %v1012_v15 = vmul.f32 0.125, %v994_v33  ;;  %v1016_v16 = vmul.f32 %v1008_v34, %v1008_v34  ;;  %v1014_v18 = vmul.f32 0.125, %v1006_v36  ;;  %v1018_v20 = vmul.f32 %v1010_v37, %v1010_v37 }
 0x38a   :  { %v1019_v22 = vsub.f32 %v1011_v11, %v1015_v12  ;;  %v1021_v23 = vsub.f32 %v1013_v13, %v1017_v14  ;;  %v5433_v44 = vsub.s32 2, %v5359_v17  ;;  %v5436_v45 = vsub.s32 3, %v5359_v17  ;;  %v1061_v12 = vld [vmem:[#allocation10] sm:$0xf] }
 0x38b   :  { %v1020_v24 = vsub.f32 %v1012_v15, %v1016_v16  ;;  %v1022_v25 = vsub.f32 %v1014_v18, %v1018_v20  ;;  %v1040_v46 = vrot.slane %v1035_v43, %v5362_v19  ;;  %v1044_v48 = vrot.slane %v1035_v43, %v5368_v21 }
 0x38c   :  { %v1023_v26 = vmax.f32 %v1019_v22, 0.0  ;;  %v1025_v27 = vmax.f32 %v1021_v23, 0.0  ;;  %v1048_v47 = vrot.slane %v1035_v43, %v5433_v44  ;;  %v1052_v50 = vrot.slane %v1035_v43, %v5436_v45 }
 0x38d   :  { %v1024_v28 = vmax.f32 %v1020_v24, 0.0  ;;  %v1026_v29 = vmax.f32 %v1022_v25, 0.0 }
 0x38e   :  { %v1027_v30 = vadd.f32 0.8, %v1023_v26  ;;  %v1029_v35 = vadd.f32 0.8, %v1025_v27 }
 0x38f   :  { %v1028_v38 = vadd.f32 0.8, %v1024_v28  ;;  %v1030_v41 = vadd.f32 0.8, %v1026_v29  ;;  %v1297_v29 = vld [vmem:[#allocation12 + $0x460] sm:$0xff] }
 0x390   :  { %4843 = vrsqrt.f32 %v1027_v30  ;;  %v1294_v30 = vld [vmem:[#allocation12 + $0x448] sm:$0xff] }
 0x391   :  { %4845 = vrsqrt.f32 %v1029_v35  ;;  %v1298_v35 = vld [vmem:[#allocation12 + $0x468] sm:$0xff] }
 0x392   :  { %4847 = vrsqrt.f32 %v1028_v38 }
 0x393   :  { %4849 = vrsqrt.f32 %v1030_v41 }
 0x39a   :  { %v4844_v49 = vpop.eup %4843 }
 0x39b   :  { %v4846_v51 = vpop.eup %4845  ;;  %v1057_v52 = vmul.f32 %v4844_v49, %v1040_v46  ;;  %v1301_v46 = vld [vmem:[#allocation12 + $0x480] sm:$0xff] }
 0x39c   :  { %v4848_v53 = vpop.eup %4847  ;;  %v1059_v54 = vmul.f32 %v4846_v51, %v1048_v47  ;;  %v1305_v49 = vld [vmem:[#allocation12 + $0x4a0] sm:$0xff]  ;;  %v1306_v51 = vld [vmem:[#allocation12 + $0x4a8] sm:$0xff] }
 0x39d   :  { %v4850_v55 = vpop.eup %4849  ;;  %v1062_v56 = vmul.f32 %v1057_v52, %v1007_v8  ;;  %v1058_v57 = vmul.f32 %v4848_v53, %v1044_v48  ;;  %v1099_v11 = vrot.slane %v1057_v52, %v5362_v19  ;;  %v4334_v48 = vcombine.high %v1294_v30, %v1298_v35 }
 0x39e   :  { %v1064_v58 = vmul.f32 %v1059_v54, %v1009_v32  ;;  %v1107_v59 = vrot.slane %v1059_v54, %v5362_v19  ;;  %v1060_v60 = vmul.f32 %v4850_v55, %v1052_v50  ;;  %v1302_v50 = vld [vmem:[#allocation12 + $0x488] sm:$0xff]  ;;  %v4333_v54 = vcombine.low %v1294_v30, %v1298_v35  ;;  %v1353_v30 = vld [vmem:[#allocation12 + $0x620] sm:$0xff] }
 0x39f   :  { %v1063_v39 = vmul.f32 %v1058_v57, %v1008_v34  ;;  %v1103_v8 = vrot.slane %v1058_v57, %v5362_v19  ;;  %v4340_v55 = vcombine.high %v1301_v46, %v1305_v49  ;;  %v1309_v57 = vld [vmem:[#allocation12 + $0x4c0] sm:$0xff]  ;;  %v4339_v61 = vcombine.low %v1301_v46, %v1305_v49  ;;  %v1350_v35 = vld [vmem:[#allocation12 + $0x608] sm:$0xff] }
 0x3a0   :  { %v1114_v2 = vmul.f32 %v1107_v59, %v5407_v4  ;;  %v1065_v5 = vmul.f32 %v1060_v60, %v1010_v37  ;;  %v1111_v32 = vrot.slane %v1060_v60, %v5362_v19  ;;  %v1112_v4 = vmul.f32 %v1099_v11, %v5405_v3  ;;  %v1310_v59 = vld [vmem:[#allocation12 + $0x4c8] sm:$0xff] }
 0x3a1   :  { %v1070_v6 = vcombine.low %v1062_v56, %v1063_v39  ;;  %v1113_v37 = vmul.f32 %v1103_v8, %v5415_v9  ;;  %v4342_v56 = vcombine.high %v1302_v50, %v1306_v51  ;;  %v1314_v60 = vld [vmem:[#allocation12 + $0x4e8] sm:$0xff]  ;;  %v4341_v62 = vcombine.low %v1302_v50, %v1306_v51  ;;  %v1357_v50 = vld [vmem:[#allocation12 + $0x640] sm:$0xff] }
 0x3a2   :  { %v1071_v7 = vcombine.low %v1064_v58, %v1065_v5  ;;  %v1115_v14 = vmul.f32 %v1111_v32, %v5417_v10  ;;  %v1293_v10 = vld [vmem:[#allocation12 + $0x440] sm:$0xff]  ;;  %v4350_v0 = vcombine.high %v1310_v59, %v1314_v60  ;;  %v1318_v39 = vld [vmem:[#allocation12 + $0x508] sm:$0xff] }
 0x3a3   :  { %v1078_v31 = vrot.slane %v1070_v6, %v5373_v40  ;;  %v4332_v47 = vcombine.high %v1293_v10, %v1297_v29  ;;  %v4331_v53 = vcombine.low %v1293_v10, %v1297_v29  ;;  %v1313_v58 = vld [vmem:[#allocation12 + $0x4e0] sm:$0xff]  ;;  %v4349_v6 = vcombine.low %v1310_v59, %v1314_v60  ;;  %v1326_v11 = vld [vmem:[#allocation12 + $0x548] sm:$0xff] }
 0x3a4   :  { %v1085_v33 = vrot.slane %v1071_v7, %v5373_v40  ;;  %v4348_v63 = vcombine.high %v1309_v57, %v1313_v58  ;;  %v4347_v5 = vcombine.low %v1309_v57, %v1313_v58  ;;  %v1330_v8 = vld [vmem:[#allocation12 + $0x568] sm:$0xff]  ;;  %v1349_v29 = vld [vmem:[#allocation12 + $0x600] sm:$0xff] }
 0x3a5   :  { %v1361_v51 = vld [vmem:[#allocation12 + $0x660] sm:$0xff] }
 0x3a6   :  { %v1086_v36 = vcombine.low %v1078_v31, %v1085_v33  ;;  %v1325_v33 = vld [vmem:[#allocation12 + $0x540] sm:$0xff]  ;;  %v4396_v57 = vcombine.high %v1357_v50, %v1361_v51 }
 0x3a7   :  { %v1365_v59 = vld [vmem:[#allocation12 + $0x680] sm:$0xff] }
 0x3a8   :  { %v1093_v13 = vrot.slane %v1086_v36, %v5373_v40  ;;  %v1329_v36 = vld [vmem:[#allocation12 + $0x560] sm:$0xff] }
 0x3a9   :  { %v1369_v60 = vld [vmem:[#allocation12 + $0x6a0] sm:$0xff] }
 0x3aa   :  { %v1095_v34 = vsub.f32 %v1061_v12, %v1093_v13  ;;  %v4364_v13 = vcombine.high %v1325_v33, %v1329_v36 }
 0x3ac   :  { %v1132_v15 = vrot.slane %v1095_v34, %v5436_v45  ;;  %v1124_v16 = vrot.slane %v1095_v34, %v5368_v21  ;;  %v1120_v18 = vrot.slane %v1095_v34, %v5362_v19  ;;  %v1128_v20 = vrot.slane %v1095_v34, %v5433_v44 }
 0x3ad   :  { %v4366_v34 = vcombine.high %v1326_v11, %v1330_v8 }
 0x3ae   :  { %v1140_v22 = vadd.f32 %v1132_v15, %v1115_v14  ;;  %v1138_v23 = vadd.f32 %v1124_v16, %v1113_v37  ;;  %v1137_v24 = vadd.f32 %v1120_v18, %v1112_v4  ;;  %v5457_v25 = vadd.f32 %v1128_v20, %v1114_v2  ;;  %v1322_v2 = vld [vmem:[#allocation12 + $0x528] sm:$0xff]  ;;  %v1333_v4 = vld [vmem:[#allocation12 + $0x580] sm:$0xff] }
 0x3af   :  { %v4358_v31 = vcombine.high %v1318_v39, %v1322_v2  ;;  %v4357_v32 = vcombine.low %v1318_v39, %v1322_v2  ;;  %v1337_v37 = vld [vmem:[#allocation12 + $0x5a0] sm:$0xff]  ;;  %v1334_v14 = vld [vmem:[#allocation12 + $0x588] sm:$0xff]  ;;  %v4363_v16 = vcombine.low %v1325_v33, %v1329_v36  ;;  %v4365_v18 = vcombine.low %v1326_v11, %v1330_v8 }
 0x3b0   :  { %vm1142_vm5 = vcmp.ge.f32.partialorder %v1138_v23, 0.0  ;;  %v1146_v26 = vmul.f32 0.2, %v1138_v23  ;;  %vm1141_vm6 = vcmp.ge.f32.partialorder %v1137_v24, 0.0  ;;  %v1145_v3 = vmul.f32 0.2, %v1137_v24 }
 0x3b1   :  { %vm1144_vm7 = vcmp.ge.f32.partialorder %v1140_v22, 0.0  ;;  %v1148_v9 = vmul.f32 0.2, %v1140_v22  ;;  %v1338_v15 = vld [vmem:[#allocation12 + $0x5a8] sm:$0xff]  ;;  %v4372_v20 = vcombine.high %v1333_v4, %v1337_v37  ;;  %v1373_v39 = vld [vmem:[#allocation12 + $0x6c0] sm:$0xff]  ;;  %vm1143_vm8 = vcmp.ge.f32.partialorder %v5457_v25, 0.0 }
 0x3b2   :  { %v1150_v27 = vsel %vm1142_vm5, %v1138_v23, %v1146_v26  ;;  %v1149_v28 = vsel %vm1141_vm6, %v1137_v24, %v1145_v3  ;;  %v1341_v23 = vld [vmem:[#allocation12 + $0x5c0] sm:$0xff]  ;;  %v1342_v26 = vld [vmem:[#allocation12 + $0x5c8] sm:$0xff]  ;;  %v4373_v10 = vcombine.low %v1334_v14, %v1338_v15 }
 0x3b3   :  { %v5459_v38 = vpack.c.bf16 %v1150_v27, %v1150_v27  ;;  %v5461_v41 = vpack.c.bf16 %v1149_v28, %v1149_v28  ;;  %v1152_v43 = vsel %vm1144_vm7, %v1140_v22, %v1148_v9  ;;  %v4374_v22 = vcombine.high %v1334_v14, %v1338_v15  ;;  %v1345_v24 = vld [vmem:[#allocation12 + $0x5e0] sm:$0xff]  ;;  %v1346_v3 = vld [vmem:[#allocation12 + $0x5e8] sm:$0xff] }
 0x3b4   :  { %v5467_v52 = vpack.c.bf16 %v1152_v43, %v1152_v43  ;;  %v4371_v9 = vcombine.low %v1333_v4, %v1337_v37  ;;  %v4380_v27 = vcombine.high %v1341_v23, %v1345_v24  ;;  %v4382_v28 = vcombine.high %v1342_v26, %v1346_v3  ;;  %v1354_v43 = vld [vmem:[#allocation12 + $0x628] sm:$0xff]  ;;  %v1377_v2 = vld [vmem:[#allocation12 + $0x6e0] sm:$0xff] }
 0x3b5   :  { %2725 = vmatprep.mubr.bf16.mxu0 %v5459_v38  ;;  %2807 = vmatprep.mubr.bf16.mxu1 %v5459_v38  ;;  %v4379_v46 = vcombine.low %v1341_v23, %v1345_v24  ;;  %v4390_v49 = vcombine.high %v1350_v35, %v1354_v43  ;;  %v4412_v33 = vcombine.high %v1373_v39, %v1377_v2  ;;  %v1381_v11 = vld [vmem:[#allocation12 + $0x700] sm:$0xff] }
 0x3b6   :  { %2726 = vmatmul.mubr.bf16.vlgmr.msra.gmra.mrb[8].mxu0 %v5461_v41  ;;  %2808 = vmatmul.mubr.bf16.vlgmr.msra.gmra.mrb[8].mxu1 %v5461_v41  ;;  %v1385_v8 = vld [vmem:[#allocation12 + $0x720] sm:$0xff] }
 0x3b7   :  { %2735 = vmatpush1.bf16.msra.mxu0 %v4323_v42  ;;  %2817 = vmatpush1.bf16.msra.mxu1 %v4325_v1  ;;  %v1317_v42 = vld [vmem:[#allocation12 + $0x500] sm:$0xff]  ;;  %v4420_v4 = vcombine.high %v1381_v11, %v1385_v8 }
 0x3b8   :  { %2766 = vmatprep.mubr.bf16.mxu0 %v5467_v52  ;;  %2848 = vmatprep.mubr.bf16.mxu1 %v5467_v52  ;;  %v1321_v1 = vld [vmem:[#allocation12 + $0x520] sm:$0xff] }
 0x3b9   :  { %2736 = vmatprep.subr.bf16.mxu0 %v4332_v47  ;;  %2818 = vmatprep.subr.bf16.mxu1 %v4334_v48  ;;  %v4356_v7 = vcombine.high %v1317_v42, %v1321_v1  ;;  %v4355_v12 = vcombine.low %v1317_v42, %v1321_v1  ;;  %v4381_v47 = vcombine.low %v1342_v26, %v1346_v3  ;;  %v1389_v14 = vld [vmem:[#allocation12 + $0x740] sm:$0xff] }
 0x3ba   :  { %v4388_v48 = vcombine.high %v1349_v29, %v1353_v30  ;;  %v4404_v42 = vcombine.high %v1365_v59, %v1369_v60  ;;  %v1393_v15 = vld [vmem:[#allocation12 + $0x760] sm:$0xff] }
 0x3bb   :  { %2737 = vmatpush1.bf16.msra.mxu0 %v4331_v53  ;;  %2819 = vmatpush1.bf16.msra.mxu1 %v4333_v54  ;;  %v1358_v53 = vld [vmem:[#allocation12 + $0x648] sm:$0xff]  ;;  %v4428_v23 = vcombine.high %v1389_v14, %v1393_v15  ;;  %v1397_v26 = vld [vmem:[#allocation12 + $0x780] sm:$0xff] }
 0x3bc   :  { %2738 = vmatprep.subr.bf16.mxu0 %v4340_v55  ;;  %2820 = vmatprep.subr.bf16.mxu1 %v4342_v56  ;;  %v1362_v54 = vld [vmem:[#allocation12 + $0x668] sm:$0xff]  ;;  %v4387_v55 = vcombine.low %v1349_v29, %v1353_v30  ;;  %v4389_v56 = vcombine.low %v1350_v35, %v1354_v43  ;;  %v1401_v3 = vld [vmem:[#allocation12 + $0x7a0] sm:$0xff] }
 0x3bd   :  { %v4398_v58 = vcombine.high %v1358_v53, %v1362_v54  ;;  %v4436_v29 = vcombine.high %v1397_v26, %v1401_v3  ;;  %v1405_v35 = vld [vmem:[#allocation12 + $0x7c0] sm:$0xff] }
 0x3be   :  { %v1409_v43 = vld [vmem:[#allocation12 + $0x7e0] sm:$0xff] }
 0x3bf   :  { %2739 = vmatpush1.bf16.msra.mxu0 %v4339_v61  ;;  %2821 = vmatpush1.bf16.msra.mxu1 %v4341_v62  ;;  %v1366_v61 = vld [vmem:[#allocation12 + $0x688] sm:$0xff] }
 0x3c0   :  { %2740 = vmatprep.subr.bf16.mxu0 %v4348_v63  ;;  %2822 = vmatprep.subr.bf16.mxu1 %v4350_v0  ;;  %v1370_v62 = vld [vmem:[#allocation12 + $0x6a8] sm:$0xff]  ;;  %v4395_v63 = vcombine.low %v1357_v50, %v1361_v51  ;;  %v4397_v0 = vcombine.low %v1358_v53, %v1362_v54  ;;  %v4444_v50 = vcombine.high %v1405_v35, %v1409_v43  ;;  %v1159_v53 = vld [vmem:[#allocation12 + $0x10] sm:$0xff]  ;;  %v1147_v54 = vmul.f32 0.2, %v5457_v25 }
 0x3c1   :  { %v4406_v1 = vcombine.high %v1366_v61, %v1370_v62 }
 0x3c3   :  { %2741 = vmatpush1.bf16.msra.mxu0 %v4347_v5  ;;  %2823 = vmatpush1.bf16.msra.mxu1 %v4349_v6  ;;  %v1374_v5 = vld [vmem:[#allocation12 + $0x6c8] sm:$0xff] }
 0x3c4   :  { %2742 = vmatprep.subr.bf16.mxu0 %v4356_v7  ;;  %2824 = vmatprep.subr.bf16.mxu1 %v4358_v31  ;;  %v1378_v6 = vld [vmem:[#allocation12 + $0x6e8] sm:$0xff]  ;;  %v4403_v7 = vcombine.low %v1365_v59, %v1369_v60  ;;  %v4405_v31 = vcombine.low %v1366_v61, %v1370_v62  ;;  %v1151_v62 = vsel %vm1143_vm8, %v5457_v25, %v1147_v54  ;;  %v1176_v25 = vld [vmem:[#allocation12 + $0x98] sm:$0xff] }
 0x3c5   :  { %v4414_v36 = vcombine.high %v1374_v5, %v1378_v6 }
 0x3c7   :  { %2743 = vmatpush1.bf16.msra.mxu0 %v4355_v12  ;;  %2825 = vmatpush1.bf16.msra.mxu1 %v4357_v32  ;;  %v1382_v12 = vld [vmem:[#allocation12 + $0x708] sm:$0xff] }
 0x3c8   :  { %2744 = vmatprep.subr.bf16.mxu0 %v4364_v13  ;;  %2826 = vmatprep.subr.bf16.mxu1 %v4366_v34  ;;  %v1386_v32 = vld [vmem:[#allocation12 + $0x728] sm:$0xff]  ;;  %v4411_v13 = vcombine.low %v1373_v39, %v1377_v2  ;;  %v4413_v34 = vcombine.low %v1374_v5, %v1378_v6  ;;  %v5480_v2 = vpack.c.bf16 %v1151_v62, %v1151_v62 }
 0x3c9   :  { %v4422_v37 = vcombine.high %v1382_v12, %v1386_v32 }
 0x3cb   :  { %2745 = vmatpush1.bf16.msra.mxu0 %v4363_v16  ;;  %2827 = vmatpush1.bf16.msra.mxu1 %v4365_v18  ;;  %v1390_v16 = vld [vmem:[#allocation12 + $0x748] sm:$0xff] }
 0x3cc   :  { %2746 = vmatprep.subr.bf16.mxu0 %v4372_v20  ;;  %2828 = vmatprep.subr.bf16.mxu1 %v4374_v22  ;;  %v1394_v18 = vld [vmem:[#allocation12 + $0x768] sm:$0xff]  ;;  %v4419_v20 = vcombine.low %v1381_v11, %v1385_v8  ;;  %v4421_v22 = vcombine.low %v1382_v12, %v1386_v32 }
 0x3cd   :  { %v4430_v24 = vcombine.high %v1390_v16, %v1394_v18 }
 0x3cf   :  { %2747 = vmatpush1.bf16.msra.mxu0 %v4371_v9  ;;  %2829 = vmatpush1.bf16.msra.mxu1 %v4373_v10  ;;  %v1398_v9 = vld [vmem:[#allocation12 + $0x788] sm:$0xff] }
 0x3d0   :  { %2748 = vmatprep.subr.bf16.mxu0 %v4380_v27  ;;  %2830 = vmatprep.subr.bf16.mxu1 %v4382_v28  ;;  %v1402_v10 = vld [vmem:[#allocation12 + $0x7a8] sm:$0xff]  ;;  %v4427_v27 = vcombine.low %v1389_v14, %v1393_v15  ;;  %v4429_v28 = vcombine.low %v1390_v16, %v1394_v18 }
 0x3d1   :  { %v4438_v30 = vcombine.high %v1398_v9, %v1402_v10 }
 0x3d3   :  { %2749 = vmatpush1.bf16.msra.mxu0 %v4379_v46  ;;  %2831 = vmatpush1.bf16.msra.mxu1 %v4381_v47  ;;  %v1406_v46 = vld [vmem:[#allocation12 + $0x7c8] sm:$0xff] }
 0x3d4   :  { %2750 = vmatprep.subr.bf16.mxu0 %v4388_v48  ;;  %2832 = vmatprep.subr.bf16.mxu1 %v4390_v49  ;;  %v1410_v47 = vld [vmem:[#allocation12 + $0x7e8] sm:$0xff]  ;;  %v4435_v48 = vcombine.low %v1397_v26, %v1401_v3  ;;  %v4437_v49 = vcombine.low %v1398_v9, %v1402_v10  ;;  %v1199_v10 = vld [vmem:[#allocation12 + $0x150] sm:$0xff] }
 0x3d5   :  { %v4446_v51 = vcombine.high %v1406_v46, %v1410_v47  ;;  %v4445_v59 = vcombine.low %v1406_v46, %v1410_v47  ;;  %v1207_v47 = vld [vmem:[#allocation12 + $0x190] sm:$0xff] }
 0x3d7   :  { %2751 = vmatpush1.bf16.msra.mxu0 %v4387_v55  ;;  %2833 = vmatpush1.bf16.msra.mxu1 %v4389_v56  ;;  %v1163_v55 = vld [vmem:[#allocation12 + $0x30] sm:$0xff]  ;;  %v1160_v56 = vld [vmem:[#allocation12 + $0x18] sm:$0xff] }
 0x3d8   :  { %2752 = vmatprep.subr.bf16.mxu0 %v4396_v57  ;;  %2834 = vmatprep.subr.bf16.mxu1 %v4398_v58  ;;  %v1164_v57 = vld [vmem:[#allocation12 + $0x38] sm:$0xff]  ;;  %v4443_v58 = vcombine.low %v1405_v35, %v1409_v43  ;;  %v4200_v60 = vcombine.high %v1159_v53, %v1163_v55  ;;  %v4199_v39 = vcombine.low %v1159_v53, %v1163_v55 }
 0x3d9   :  { %v4202_v61 = vcombine.high %v1160_v56, %v1164_v57  ;;  %v4201_v5 = vcombine.low %v1160_v56, %v1164_v57  ;;  %v1215_v56 = vld [vmem:[#allocation12 + $0x1d0] sm:$0xff] }
 0x3da   :  { %v1219_v57 = vld [vmem:[#allocation12 + $0x1f0] sm:$0xff] }
 0x3db   :  { %2753 = vmatpush1.bf16.msra.mxu0 %v4395_v63  ;;  %2835 = vmatpush1.bf16.msra.mxu1 %v4397_v0  ;;  %v1167_v63 = vld [vmem:[#allocation12 + $0x50] sm:$0xff]  ;;  %v4256_v62 = vcombine.high %v1215_v56, %v1219_v57 }
 0x3dc   :  { %2754 = vmatprep.subr.bf16.mxu0 %v4404_v42  ;;  %2836 = vmatprep.subr.bf16.mxu1 %v4406_v1  ;;  %v1171_v0 = vld [vmem:[#allocation12 + $0x70] sm:$0xff]  ;;  %v1168_v42 = vld [vmem:[#allocation12 + $0x58] sm:$0xff] }
 0x3dd   :  { %v1172_v1 = vld [vmem:[#allocation12 + $0x78] sm:$0xff]  ;;  %v4208_v6 = vcombine.high %v1167_v63, %v1171_v0  ;;  %v4207_v11 = vcombine.low %v1167_v63, %v1171_v0  ;;  %v1223_v0 = vld [vmem:[#allocation12 + $0x210] sm:$0xff] }
 0x3de   :  { %v4209_v8 = vcombine.low %v1168_v42, %v1172_v1 }
 0x3df   :  { %2755 = vmatpush1.bf16.msra.mxu0 %v4403_v7  ;;  %2837 = vmatpush1.bf16.msra.mxu1 %v4405_v31  ;;  %v4210_v7 = vcombine.high %v1168_v42, %v1172_v1  ;;  %v1175_v31 = vld [vmem:[#allocation12 + $0x90] sm:$0xff]  ;;  %v1224_v1 = vld [vmem:[#allocation12 + $0x218] sm:$0xff] }
 0x3e0   :  { %2756 = vmatprep.subr.bf16.mxu0 %v4412_v33  ;;  %2838 = vmatprep.subr.bf16.mxu1 %v4414_v36  ;;  %v1179_v33 = vld [vmem:[#allocation12 + $0xb0] sm:$0xff]  ;;  %v1180_v36 = vld [vmem:[#allocation12 + $0xb8] sm:$0xff] }
 0x3e1   :  { %v4216_v12 = vcombine.high %v1175_v31, %v1179_v33  ;;  %v4218_v32 = vcombine.high %v1176_v25, %v1180_v36  ;;  %v4215_v14 = vcombine.low %v1175_v31, %v1179_v33  ;;  %v4217_v15 = vcombine.low %v1176_v25, %v1180_v36  ;;  %v1227_v42 = vld [vmem:[#allocation12 + $0x230] sm:$0xff]  ;;  %v1232_v36 = vld [vmem:[#allocation12 + $0x258] sm:$0xff] }
 0x3e2   :  { %v1231_v33 = vld [vmem:[#allocation12 + $0x250] sm:$0xff] }
 0x3e3   :  { %2757 = vmatpush1.bf16.msra.mxu0 %v4411_v13  ;;  %2839 = vmatpush1.bf16.msra.mxu1 %v4413_v34  ;;  %v1183_v13 = vld [vmem:[#allocation12 + $0xd0] sm:$0xff] }
 0x3e4   :  { %2758 = vmatprep.subr.bf16.mxu0 %v4420_v4  ;;  %2840 = vmatprep.subr.bf16.mxu1 %v4422_v37  ;;  %v1187_v34 = vld [vmem:[#allocation12 + $0xf0] sm:$0xff]  ;;  %v1184_v4 = vld [vmem:[#allocation12 + $0xd8] sm:$0xff] }
 0x3e5   :  { %v1188_v37 = vld [vmem:[#allocation12 + $0xf8] sm:$0xff]  ;;  %v4224_v16 = vcombine.high %v1183_v13, %v1187_v34  ;;  %v1235_v25 = vld [vmem:[#allocation12 + $0x270] sm:$0xff] }
 0x3e6   :  { %v4226_v18 = vcombine.high %v1184_v4, %v1188_v37  ;;  %v4225_v26 = vcombine.low %v1184_v4, %v1188_v37  ;;  %v1243_v4 = vld [vmem:[#allocation12 + $0x2b0] sm:$0xff]  ;;  %v1240_v37 = vld [vmem:[#allocation12 + $0x298] sm:$0xff] }
 0x3e7   :  { %2759 = vmatpush1.bf16.msra.mxu0 %v4419_v20  ;;  %2841 = vmatpush1.bf16.msra.mxu1 %v4421_v22  ;;  %v1191_v20 = vld [vmem:[#allocation12 + $0x110] sm:$0xff] }
 0x3e8   :  { %2760 = vmatprep.subr.bf16.mxu0 %v4428_v23  ;;  %2842 = vmatprep.subr.bf16.mxu1 %v4430_v24  ;;  %v1195_v22 = vld [vmem:[#allocation12 + $0x130] sm:$0xff]  ;;  %v1196_v23 = vld [vmem:[#allocation12 + $0x138] sm:$0xff]  ;;  %v4223_v24 = vcombine.low %v1183_v13, %v1187_v34 }
 0x3e9   :  { %v4232_v3 = vcombine.high %v1191_v20, %v1195_v22  ;;  %v1239_v34 = vld [vmem:[#allocation12 + $0x290] sm:$0xff] }
 0x3eb   :  { %2761 = vmatpush1.bf16.msra.mxu0 %v4427_v27  ;;  %2843 = vmatpush1.bf16.msra.mxu1 %v4429_v28  ;;  %v1203_v27 = vld [vmem:[#allocation12 + $0x170] sm:$0xff]  ;;  %v1200_v28 = vld [vmem:[#allocation12 + $0x158] sm:$0xff] }
 0x3ec   :  { %2762 = vmatprep.subr.bf16.mxu0 %v4436_v29  ;;  %2844 = vmatprep.subr.bf16.mxu1 %v4438_v30  ;;  %v1204_v29 = vld [vmem:[#allocation12 + $0x178] sm:$0xff]  ;;  %v4231_v30 = vcombine.low %v1191_v20, %v1195_v22  ;;  %v4240_v43 = vcombine.high %v1199_v10, %v1203_v27  ;;  %v1247_v22 = vld [vmem:[#allocation12 + $0x2d0] sm:$0xff] }
 0x3ed   :  { %v4242_v46 = vcombine.high %v1200_v28, %v1204_v29  ;;  %v4241_v53 = vcombine.low %v1200_v28, %v1204_v29  ;;  %v1259_v28 = vld [vmem:[#allocation12 + $0x330] sm:$0xff]  ;;  %v1256_v29 = vld [vmem:[#allocation12 + $0x318] sm:$0xff] }
 0x3ef   :  { %2763 = vmatpush1.bf16.msra.mxu0 %v4435_v48  ;;  %2845 = vmatpush1.bf16.msra.mxu1 %v4437_v49  ;;  %v1211_v48 = vld [vmem:[#allocation12 + $0x1b0] sm:$0xff]  ;;  %v1208_v49 = vld [vmem:[#allocation12 + $0x198] sm:$0xff] }
 0x3f0   :  { %2764 = vmatprep.subr.bf16.mxu0 %v4444_v50  ;;  %2846 = vmatprep.subr.bf16.mxu1 %v4446_v51  ;;  %v1212_v50 = vld [vmem:[#allocation12 + $0x1b8] sm:$0xff]  ;;  %v4239_v51 = vcombine.low %v1199_v10, %v1203_v27  ;;  %v4248_v54 = vcombine.high %v1207_v47, %v1211_v48  ;;  %v1255_v27 = vld [vmem:[#allocation12 + $0x310] sm:$0xff] }
 0x3f1   :  { %v4250_v55 = vcombine.high %v1208_v49, %v1212_v50 }
 0x3f3   :  { %2765 = vmatpush1.bf16.msra.mxu0 %v4443_v58  ;;  %2847 = vmatpush1.bf16.msra.mxu1 %v4445_v59  ;;  %v1216_v58 = vld [vmem:[#allocation12 + $0x1d8] sm:$0xff] }
 0x3f4   :  { %2857 = vmatprep.subr.bf16.mxu0 %v4200_v60  ;;  %2939 = vmatprep.subr.bf16.mxu1 %v4202_v61  ;;  %v1220_v59 = vld [vmem:[#allocation12 + $0x1f8] sm:$0xff]  ;;  %v4247_v60 = vcombine.low %v1207_v47, %v1211_v48  ;;  %v4249_v61 = vcombine.low %v1208_v49, %v1212_v50  ;;  %v1263_v48 = vld [vmem:[#allocation12 + $0x350] sm:$0xff] }
 0x3f5   :  { %v4258_v63 = vcombine.high %v1216_v58, %v1220_v59  ;;  %v1267_v49 = vld [vmem:[#allocation12 + $0x370] sm:$0xff]  ;;  %v1264_v50 = vld [vmem:[#allocation12 + $0x358] sm:$0xff] }
 0x3f6   :  { %2767 = vmatmul.mubr.bf16.vlgmr.msra.gmra.mrb[8].mxu0 %v5480_v2  ;;  %2849 = vmatmul.mubr.bf16.vlgmr.msra.gmra.mrb[8].mxu1 %v5480_v2 }
 0x3f7   :  { %2858 = vmatpush1.bf16.msra.mxu0 %v4199_v39  ;;  %2889 = vmatprep.mubr.bf16.mxu0 %v5459_v38  ;;  %v1228_v39 = vld [vmem:[#allocation12 + $0x238] sm:$0xff] }
 0x3f8   :  { %2940 = vmatpush1.bf16.msra.mxu1 %v4201_v5  ;;  %2971 = vmatprep.mubr.bf16.mxu1 %v5459_v38  ;;  %v1192_v38 = vld [vmem:[#allocation12 + $0x118] sm:$0xff]  ;;  %v4255_v5 = vcombine.low %v1215_v56, %v1219_v57  ;;  %v4266_v31 = vcombine.high %v1224_v1, %v1228_v39  ;;  %v1271_v57 = vld [vmem:[#allocation12 + $0x390] sm:$0xff] }
 0x3f9   :  { %2859 = vmatprep.subr.bf16.mxu0 %v4208_v6  ;;  %2941 = vmatprep.subr.bf16.mxu1 %v4210_v7  ;;  %v4234_v9 = vcombine.high %v1192_v38, %v1196_v23  ;;  %v4233_v35 = vcombine.low %v1192_v38, %v1196_v23  ;;  %v4257_v6 = vcombine.low %v1216_v58, %v1220_v59  ;;  %v1251_v38 = vld [vmem:[#allocation12 + $0x2f0] sm:$0xff]  ;;  %v1248_v23 = vld [vmem:[#allocation12 + $0x2d8] sm:$0xff] }
 0x3fa   :  { %v4264_v7 = vcombine.high %v1223_v0, %v1227_v42  ;;  %v1275_v58 = vld [vmem:[#allocation12 + $0x3b0] sm:$0xff]  ;;  %v1272_v59 = vld [vmem:[#allocation12 + $0x398] sm:$0xff] }
 0x3fb   :  { %2860 = vmatpush1.bf16.msra.mxu0 %v4207_v11  ;;  %v1236_v11 = vld [vmem:[#allocation12 + $0x278] sm:$0xff] }
 0x3fc   :  { %2942 = vmatpush1.bf16.msra.mxu1 %v4209_v8  ;;  %2861 = vmatprep.subr.bf16.mxu0 %v4216_v12  ;;  %v4263_v8 = vcombine.low %v1223_v0, %v1227_v42  ;;  %v4265_v12 = vcombine.low %v1224_v1, %v1228_v39  ;;  %v4274_v13 = vcombine.high %v1232_v36, %v1236_v11  ;;  %v1279_v42 = vld [vmem:[#allocation12 + $0x3d0] sm:$0xff]  ;;  %v1280_v39 = vld [vmem:[#allocation12 + $0x3d8] sm:$0xff] }
 0x3fd   :  { %2943 = vmatprep.subr.bf16.mxu1 %v4218_v32  ;;  %v4272_v32 = vcombine.high %v1231_v33, %v1235_v25  ;;  %v1283_v1 = vld [vmem:[#allocation12 + $0x3f0] sm:$0xff] }
 0x3ff   :  { %2862 = vmatpush1.bf16.msra.mxu0 %v4215_v14  ;;  %v1244_v14 = vld [vmem:[#allocation12 + $0x2b8] sm:$0xff] }
 0x400   :  { %2944 = vmatpush1.bf16.msra.mxu1 %v4217_v15  ;;  %2863 = vmatprep.subr.bf16.mxu0 %v4224_v16  ;;  %v4271_v15 = vcombine.low %v1231_v33, %v1235_v25  ;;  %v4273_v16 = vcombine.low %v1232_v36, %v1236_v11  ;;  %v4282_v20 = vcombine.high %v1240_v37, %v1244_v14  ;;  %v1287_v25 = vld [vmem:[#allocation12 + $0x410] sm:$0xff]  ;;  %v1288_v11 = vld [vmem:[#allocation12 + $0x418] sm:$0xff] }
 0x401   :  { %2945 = vmatprep.subr.bf16.mxu1 %v4226_v18  ;;  %v4280_v18 = vcombine.high %v1239_v34, %v1243_v4  ;;  %v1291_v36 = vld [vmem:[#allocation12 + $0x430] sm:$0xff] }
 0x403   :  { %2864 = vmatpush1.bf16.msra.mxu0 %v4223_v24  ;;  %v1252_v24 = vld [vmem:[#allocation12 + $0x2f8] sm:$0xff] }
 0x404   :  { %2946 = vmatpush1.bf16.msra.mxu1 %v4225_v26  ;;  %2865 = vmatprep.subr.bf16.mxu0 %v4232_v3  ;;  %v4279_v26 = vcombine.low %v1239_v34, %v1243_v4  ;;  %v4281_v3 = vcombine.low %v1240_v37, %v1244_v14  ;;  %v4290_v10 = vcombine.high %v1248_v23, %v1252_v24  ;;  %v1295_v4 = vld [vmem:[#allocation12 + $0x450] sm:$0xff] }
 0x405   :  { %2947 = vmatprep.subr.bf16.mxu1 %v4234_v9  ;;  %v4288_v9 = vcombine.high %v1247_v22, %v1251_v38  ;;  %v1299_v37 = vld [vmem:[#allocation12 + $0x470] sm:$0xff]  ;;  %v4327_v14 = vcombine.low %v1287_v25, %v1291_v36 }
 0x407   :  { %2866 = vmatpush1.bf16.msra.mxu0 %v4231_v30  ;;  %v1260_v30 = vld [vmem:[#allocation12 + $0x338] sm:$0xff] }
 0x408   :  { %2948 = vmatpush1.bf16.msra.mxu1 %v4233_v35  ;;  %2867 = vmatprep.subr.bf16.mxu0 %v4240_v43  ;;  %v4287_v35 = vcombine.low %v1247_v22, %v1251_v38  ;;  %v4289_v43 = vcombine.low %v1248_v23, %v1252_v24  ;;  %v4298_v47 = vcombine.high %v1256_v29, %v1260_v30  ;;  %v1303_v22 = vld [vmem:[#allocation12 + $0x490] sm:$0xff]  ;;  %v1304_v24 = vld [vmem:[#allocation12 + $0x498] sm:$0xff] }
 0x409   :  { %2949 = vmatprep.subr.bf16.mxu1 %v4242_v46  ;;  %v4296_v46 = vcombine.high %v1255_v27, %v1259_v28  ;;  %v1307_v38 = vld [vmem:[#allocation12 + $0x4b0] sm:$0xff] }
 0x40b   :  { %2868 = vmatpush1.bf16.msra.mxu0 %v4239_v51  ;;  %v1268_v51 = vld [vmem:[#allocation12 + $0x378] sm:$0xff] }
 0x40c   :  { %2950 = vmatpush1.bf16.msra.mxu1 %v4241_v53  ;;  %2869 = vmatprep.subr.bf16.mxu0 %v4248_v54  ;;  %v4295_v53 = vcombine.low %v1255_v27, %v1259_v28  ;;  %v4297_v54 = vcombine.low %v1256_v29, %v1260_v30  ;;  %v4306_v56 = vcombine.high %v1264_v50, %v1268_v51  ;;  %v1311_v28 = vld [vmem:[#allocation12 + $0x4d0] sm:$0xff]  ;;  %v1312_v30 = vld [vmem:[#allocation12 + $0x4d8] sm:$0xff] }
 0x40d   :  { %2951 = vmatprep.subr.bf16.mxu1 %v4250_v55  ;;  %v4304_v55 = vcombine.high %v1263_v48, %v1267_v49  ;;  %v1315_v29 = vld [vmem:[#allocation12 + $0x4f0] sm:$0xff] }
 0x40f   :  { %2870 = vmatpush1.bf16.msra.mxu0 %v4247_v60  ;;  %v1276_v60 = vld [vmem:[#allocation12 + $0x3b8] sm:$0xff] }
 0x410   :  { %2952 = vmatpush1.bf16.msra.mxu1 %v4249_v61  ;;  %2871 = vmatprep.subr.bf16.mxu0 %v4256_v62  ;;  %v4303_v61 = vcombine.low %v1263_v48, %v1267_v49  ;;  %v4305_v62 = vcombine.low %v1264_v50, %v1268_v51  ;;  %v4314_v0 = vcombine.high %v1272_v59, %v1276_v60  ;;  %v1319_v48 = vld [vmem:[#allocation12 + $0x510] sm:$0xff]  ;;  %v1320_v50 = vld [vmem:[#allocation12 + $0x518] sm:$0xff] }
 0x411   :  { %2953 = vmatprep.subr.bf16.mxu1 %v4258_v63  ;;  %v4312_v63 = vcombine.high %v1271_v57, %v1275_v58  ;;  %v1323_v49 = vld [vmem:[#allocation12 + $0x530] sm:$0xff]  ;;  %v1324_v51 = vld [vmem:[#allocation12 + $0x538] sm:$0xff] }
 0x413   :  { %2872 = vmatpush1.bf16.msra.mxu0 %v4255_v5  ;;  %v1284_v5 = vld [vmem:[#allocation12 + $0x3f8] sm:$0xff] }
 0x414   :  { %2954 = vmatpush1.bf16.msra.mxu1 %v4257_v6  ;;  %2873 = vmatprep.subr.bf16.mxu0 %v4264_v7  ;;  %v4311_v6 = vcombine.low %v1271_v57, %v1275_v58  ;;  %v4313_v7 = vcombine.low %v1272_v59, %v1276_v60  ;;  %v4322_v33 = vcombine.high %v1280_v39, %v1284_v5  ;;  %v1331_v57 = vld [vmem:[#allocation12 + $0x570] sm:$0xff]  ;;  %v1328_v58 = vld [vmem:[#allocation12 + $0x558] sm:$0xff] }
 0x415   :  { %2955 = vmatprep.subr.bf16.mxu1 %v4266_v31  ;;  %v4320_v31 = vcombine.high %v1279_v42, %v1283_v1  ;;  %v1332_v59 = vld [vmem:[#allocation12 + $0x578] sm:$0xff]  ;;  %v4359_v60 = vcombine.low %v1319_v48, %v1323_v49 }
 0x417   :  { %2874 = vmatpush1.bf16.msra.mxu0 %v4263_v8  ;;  %v1292_v8 = vld [vmem:[#allocation12 + $0x438] sm:$0xff] }
 0x418   :  { %2956 = vmatpush1.bf16.msra.mxu1 %v4265_v12  ;;  %2875 = vmatprep.subr.bf16.mxu0 %v4272_v32  ;;  %v4319_v12 = vcombine.low %v1279_v42, %v1283_v1  ;;  %v4321_v32 = vcombine.low %v1280_v39, %v1284_v5  ;;  %v4330_v34 = vcombine.high %v1288_v11, %v1292_v8  ;;  %v1339_v42 = vld [vmem:[#allocation12 + $0x5b0] sm:$0xff]  ;;  %v1336_v1 = vld [vmem:[#allocation12 + $0x598] sm:$0xff] }
 0x419   :  { %2957 = vmatprep.subr.bf16.mxu1 %v4274_v13  ;;  %v4328_v13 = vcombine.high %v1287_v25, %v1291_v36  ;;  %v1340_v39 = vld [vmem:[#allocation12 + $0x5b8] sm:$0xff]  ;;  %v1347_v25 = vld [vmem:[#allocation12 + $0x5f0] sm:$0xff] }
 0x41a   :  { %v1344_v36 = vld [vmem:[#allocation12 + $0x5d8] sm:$0xff] }
 0x41b   :  { %2876 = vmatpush1.bf16.msra.mxu0 %v4271_v15  ;;  %v1296_v15 = vld [vmem:[#allocation12 + $0x458] sm:$0xff] }
 0x41c   :  { %2958 = vmatpush1.bf16.msra.mxu1 %v4273_v16  ;;  %2877 = vmatprep.subr.bf16.mxu0 %v4280_v18  ;;  %v1300_v16 = vld [vmem:[#allocation12 + $0x478] sm:$0xff]  ;;  %v4329_v18 = vcombine.low %v1288_v11, %v1292_v8 }
 0x41d   :  { %2959 = vmatprep.subr.bf16.mxu1 %v4282_v20  ;;  %v4336_v20 = vcombine.high %v1295_v4, %v1299_v37  ;;  %v4338_v23 = vcombine.high %v1296_v15, %v1300_v16  ;;  %v1348_v11 = vld [vmem:[#allocation12 + $0x5f8] sm:$0xff] }
 0x41f   :  { %2878 = vmatpush1.bf16.msra.mxu0 %v4279_v26  ;;  %v1308_v26 = vld [vmem:[#allocation12 + $0x4b8] sm:$0xff] }
 0x420   :  { %2960 = vmatpush1.bf16.msra.mxu1 %v4281_v3  ;;  %2879 = vmatprep.subr.bf16.mxu0 %v4288_v9  ;;  %v4335_v3 = vcombine.low %v1295_v4, %v1299_v37  ;;  %v4337_v9 = vcombine.low %v1296_v15, %v1300_v16  ;;  %v4346_v27 = vcombine.high %v1304_v24, %v1308_v26  ;;  %v1355_v4 = vld [vmem:[#allocation12 + $0x630] sm:$0xff]  ;;  %v1352_v37 = vld [vmem:[#allocation12 + $0x618] sm:$0xff] }
 0x421   :  { %2961 = vmatprep.subr.bf16.mxu1 %v4290_v10  ;;  %v4344_v10 = vcombine.high %v1303_v22, %v1307_v38  ;;  %v4385_v16 = vcombine.low %v1344_v36, %v1348_v11 }
 0x423   :  { %2880 = vmatpush1.bf16.msra.mxu0 %v4287_v35  ;;  %v1316_v35 = vld [vmem:[#allocation12 + $0x4f8] sm:$0xff] }
 0x424   :  { %2962 = vmatpush1.bf16.msra.mxu1 %v4289_v43  ;;  %2881 = vmatprep.subr.bf16.mxu0 %v4296_v46  ;;  %v4343_v43 = vcombine.low %v1303_v22, %v1307_v38  ;;  %v4352_v46 = vcombine.high %v1311_v28, %v1315_v29  ;;  %v1359_v22 = vld [vmem:[#allocation12 + $0x650] sm:$0xff] }
 0x425   :  { %2963 = vmatprep.subr.bf16.mxu1 %v4298_v47  ;;  %v4354_v47 = vcombine.high %v1312_v30, %v1316_v35  ;;  %v1363_v38 = vld [vmem:[#allocation12 + $0x670] sm:$0xff] }
 0x427   :  { %2882 = vmatpush1.bf16.msra.mxu0 %v4295_v53  ;;  %v4353_v53 = vcombine.low %v1312_v30, %v1316_v35  ;;  %v1372_v30 = vld [vmem:[#allocation12 + $0x6b8] sm:$0xff]  ;;  %v4399_v35 = vcombine.low %v1359_v22, %v1363_v38 }
 0x428   :  { %2964 = vmatpush1.bf16.msra.mxu1 %v4297_v54  ;;  %2883 = vmatprep.subr.bf16.mxu0 %v4304_v55  ;;  %v4360_v54 = vcombine.high %v1319_v48, %v1323_v49  ;;  %v4362_v55 = vcombine.high %v1320_v50, %v1324_v51  ;;  %v1379_v48 = vld [vmem:[#allocation12 + $0x6f0] sm:$0xff]  ;;  %v1376_v49 = vld [vmem:[#allocation12 + $0x6d8] sm:$0xff] }
 0x429   :  { %2965 = vmatprep.subr.bf16.mxu1 %v4306_v56  ;;  %v1327_v56 = vld [vmem:[#allocation12 + $0x550] sm:$0xff] }
 0x42a   :  { %v4367_v5 = vcombine.low %v1327_v56, %v1331_v57 }
 0x42b   :  { %2884 = vmatpush1.bf16.msra.mxu0 %v4303_v61  ;;  %v4361_v61 = vcombine.low %v1320_v50, %v1324_v51  ;;  %v1380_v50 = vld [vmem:[#allocation12 + $0x6f8] sm:$0xff] }
 0x42c   :  { %2966 = vmatpush1.bf16.msra.mxu1 %v4305_v62  ;;  %2885 = vmatprep.subr.bf16.mxu0 %v4312_v63  ;;  %v4368_v62 = vcombine.high %v1327_v56, %v1331_v57  ;;  %v4370_v63 = vcombine.high %v1328_v58, %v1332_v59  ;;  %v1387_v56 = vld [vmem:[#allocation12 + $0x730] sm:$0xff]  ;;  %v1384_v57 = vld [vmem:[#allocation12 + $0x718] sm:$0xff] }
 0x42d   :  { %2967 = vmatprep.subr.bf16.mxu1 %v4314_v0  ;;  %v1335_v0 = vld [vmem:[#allocation12 + $0x590] sm:$0xff] }
 0x42e   :  { %v4375_v8 = vcombine.low %v1335_v0, %v1339_v42 }
 0x42f   :  { %2886 = vmatpush1.bf16.msra.mxu0 %v4311_v6  ;;  %v4369_v6 = vcombine.low %v1328_v58, %v1332_v59  ;;  %v1388_v58 = vld [vmem:[#allocation12 + $0x738] sm:$0xff] }
 0x430   :  { %2968 = vmatpush1.bf16.msra.mxu1 %v4313_v7  ;;  %2887 = vmatprep.subr.bf16.mxu0 %v4320_v31  ;;  %v4376_v7 = vcombine.high %v1335_v0, %v1339_v42  ;;  %v4378_v31 = vcombine.high %v1336_v1, %v1340_v39  ;;  %v1395_v0 = vld [vmem:[#allocation12 + $0x770] sm:$0xff]  ;;  %v1392_v42 = vld [vmem:[#allocation12 + $0x758] sm:$0xff] }
 0x431   :  { %2969 = vmatprep.subr.bf16.mxu1 %v4322_v33  ;;  %v1343_v33 = vld [vmem:[#allocation12 + $0x5d0] sm:$0xff] }
 0x432   :  { %v4383_v15 = vcombine.low %v1343_v33, %v1347_v25 }
 0x433   :  { %2888 = vmatpush1.bf16.msra.mxu0 %v4319_v12  ;;  %v4377_v12 = vcombine.low %v1336_v1, %v1340_v39  ;;  %v1396_v1 = vld [vmem:[#allocation12 + $0x778] sm:$0xff] }
 0x434   :  { %2970 = vmatpush1.bf16.msra.mxu1 %v4321_v32  ;;  %2898 = vmatprep.subr.bf16.mxu0 %v4328_v13  ;;  %v4384_v32 = vcombine.high %v1343_v33, %v1347_v25  ;;  %v4386_v13 = vcombine.high %v1344_v36, %v1348_v11  ;;  %v1403_v33 = vld [vmem:[#allocation12 + $0x7b0] sm:$0xff]  ;;  %v1400_v25 = vld [vmem:[#allocation12 + $0x798] sm:$0xff] }
 0x435   :  { %2980 = vmatprep.subr.bf16.mxu1 %v4330_v34  ;;  %v1351_v34 = vld [vmem:[#allocation12 + $0x610] sm:$0xff]  ;;  %v1404_v36 = vld [vmem:[#allocation12 + $0x7b8] sm:$0xff] }
 0x436   :  { %2890 = vmatmul.mubr.bf16.vlgmr.msra.gmra.mrb[12].mxu0 %v5461_v41 }
 0x437   :  { %2972 = vmatmul.mubr.bf16.vlgmr.msra.gmra.mrb[12].mxu1 %v5461_v41  ;;  %2899 = vmatpush1.bf16.msra.mxu0 %v4327_v14  ;;  %v4345_v41 = vcombine.low %v1304_v24, %v1308_v26  ;;  %v1356_v14 = vld [vmem:[#allocation12 + $0x638] sm:$0xff]  ;;  %v4391_v26 = vcombine.low %v1351_v34, %v1355_v4 }
 0x438   :  { %2930 = vmatprep.mubr.bf16.mxu0 %v5467_v52  ;;  %2981 = vmatpush1.bf16.msra.mxu1 %v4329_v18  ;;  %v4392_v18 = vcombine.high %v1351_v34, %v1355_v4  ;;  %v1364_v24 = vld [vmem:[#allocation12 + $0x678] sm:$0xff]  ;;  %v1411_v34 = vld [vmem:[#allocation12 + $0x7f0] sm:$0xff] }
 0x439   :  { %3012 = vmatprep.mubr.bf16.mxu1 %v5467_v52  ;;  %2900 = vmatprep.subr.bf16.mxu0 %v4336_v20  ;;  %v4351_v52 = vcombine.low %v1311_v28, %v1315_v29  ;;  %v4394_v20 = vcombine.high %v1352_v37, %v1356_v14  ;;  %v1371_v28 = vld [vmem:[#allocation12 + $0x6b0] sm:$0xff]  ;;  %v1368_v29 = vld [vmem:[#allocation12 + $0x698] sm:$0xff] }
 0x43a   :  { %2982 = vmatprep.subr.bf16.mxu1 %v4338_v23  ;;  %v1360_v23 = vld [vmem:[#allocation12 + $0x658] sm:$0xff] }
 0x43b   :  { %2901 = vmatpush1.bf16.msra.mxu0 %v4335_v3  ;;  %v4393_v3 = vcombine.low %v1352_v37, %v1356_v14  ;;  %v1408_v4 = vld [vmem:[#allocation12 + $0x7d8] sm:$0xff] }
 0x43c   :  { %2983 = vmatpush1.bf16.msra.mxu1 %v4337_v9  ;;  %2902 = vmatprep.subr.bf16.mxu0 %v4344_v10  ;;  %v4400_v9 = vcombine.high %v1359_v22, %v1363_v38  ;;  %v4402_v10 = vcombine.high %v1360_v23, %v1364_v24  ;;  %v1412_v37 = vld [vmem:[#allocation12 + $0x7f8] sm:$0xff] }
 0x43d   :  { %2984 = vmatprep.subr.bf16.mxu1 %v4346_v27  ;;  %v1367_v27 = vld [vmem:[#allocation12 + $0x690] sm:$0xff]  ;;  %v4449_v22 = vcombine.low %v1408_v4, %v1412_v37 }
 0x43e   :  { %v4407_v51 = vcombine.low %v1367_v27, %v1371_v28 }
 0x43f   :  { %2903 = vmatpush1.bf16.msra.mxu0 %v4343_v43  ;;  %v4401_v43 = vcombine.low %v1360_v23, %v1364_v24 }
 0x440   :  { %2985 = vmatpush1.bf16.msra.mxu1 %v4345_v41  ;;  %2904 = vmatprep.subr.bf16.mxu0 %v4352_v46  ;;  %v4408_v41 = vcombine.high %v1367_v27, %v1371_v28  ;;  %v4410_v46 = vcombine.high %v1368_v29, %v1372_v30 }
 0x441   :  { %2986 = vmatprep.subr.bf16.mxu1 %v4354_v47  ;;  %v1375_v47 = vld [vmem:[#allocation12 + $0x6d0] sm:$0xff] }
 0x442   :  { %v4415_v59 = vcombine.low %v1375_v47, %v1379_v48 }
 0x443   :  { %2905 = vmatpush1.bf16.msra.mxu0 %v4351_v52  ;;  %v4409_v52 = vcombine.low %v1368_v29, %v1372_v30 }
 0x444   :  { %2987 = vmatpush1.bf16.msra.mxu1 %v4353_v53  ;;  %2906 = vmatprep.subr.bf16.mxu0 %v4360_v54  ;;  %v4416_v53 = vcombine.high %v1375_v47, %v1379_v48  ;;  %v4418_v54 = vcombine.high %v1376_v49, %v1380_v50 }
 0x445   :  { %2988 = vmatprep.subr.bf16.mxu1 %v4362_v55  ;;  %v1383_v55 = vld [vmem:[#allocation12 + $0x710] sm:$0xff] }
 0x446   :  { %v4423_v39 = vcombine.low %v1383_v55, %v1387_v56 }
 0x447   :  { %2907 = vmatpush1.bf16.msra.mxu0 %v4359_v60  ;;  %v4417_v60 = vcombine.low %v1376_v49, %v1380_v50 }
 0x448   :  { %2989 = vmatpush1.bf16.msra.mxu1 %v4361_v61  ;;  %2908 = vmatprep.subr.bf16.mxu0 %v4368_v62  ;;  %v4424_v61 = vcombine.high %v1383_v55, %v1387_v56  ;;  %v4426_v62 = vcombine.high %v1384_v57, %v1388_v58 }
 0x449   :  { %2990 = vmatprep.subr.bf16.mxu1 %v4370_v63  ;;  %v1391_v63 = vld [vmem:[#allocation12 + $0x750] sm:$0xff] }
 0x44a   :  { %v4431_v11 = vcombine.low %v1391_v63, %v1395_v0 }
 0x44b   :  { %2909 = vmatpush1.bf16.msra.mxu0 %v4367_v5  ;;  %v4425_v5 = vcombine.low %v1384_v57, %v1388_v58 }
 0x44c   :  { %2991 = vmatpush1.bf16.msra.mxu1 %v4369_v6  ;;  %2910 = vmatprep.subr.bf16.mxu0 %v4376_v7  ;;  %v4432_v6 = vcombine.high %v1391_v63, %v1395_v0  ;;  %v4434_v7 = vcombine.high %v1392_v42, %v1396_v1 }
 0x44d   :  { %2992 = vmatprep.subr.bf16.mxu1 %v4378_v31  ;;  %v1399_v31 = vld [vmem:[#allocation12 + $0x790] sm:$0xff] }
 0x44e   :  { %v4439_v14 = vcombine.low %v1399_v31, %v1403_v33 }
 0x44f   :  { %2911 = vmatpush1.bf16.msra.mxu0 %v4375_v8  ;;  %v4433_v8 = vcombine.low %v1392_v42, %v1396_v1 }
 0x450   :  { %2993 = vmatpush1.bf16.msra.mxu1 %v4377_v12  ;;  %2912 = vmatprep.subr.bf16.mxu0 %v4384_v32  ;;  %v4440_v12 = vcombine.high %v1399_v31, %v1403_v33  ;;  %v4442_v32 = vcombine.high %v1400_v25, %v1404_v36 }
 0x451   :  { %2994 = vmatprep.subr.bf16.mxu1 %v4386_v13  ;;  %v1407_v13 = vld [vmem:[#allocation12 + $0x7d0] sm:$0xff] }
 0x453   :  { %2913 = vmatpush1.bf16.msra.mxu0 %v4383_v15  ;;  %v4441_v15 = vcombine.low %v1400_v25, %v1404_v36 }
 0x454   :  { %2995 = vmatpush1.bf16.msra.mxu1 %v4385_v16  ;;  %2914 = vmatprep.subr.bf16.mxu0 %v4392_v18  ;;  %v4448_v16 = vcombine.high %v1407_v13, %v1411_v34  ;;  %v4450_v18 = vcombine.high %v1408_v4, %v1412_v37 }
 0x455   :  { %2996 = vmatprep.subr.bf16.mxu1 %v4394_v20  ;;  %v4447_v20 = vcombine.low %v1407_v13, %v1411_v34 }
 0x457   :  { %2915 = vmatpush1.bf16.msra.mxu0 %v4391_v26 }
 0x458   :  { %2997 = vmatpush1.bf16.msra.mxu1 %v4393_v3  ;;  %2916 = vmatprep.subr.bf16.mxu0 %v4400_v9 }
 0x459   :  { %2998 = vmatprep.subr.bf16.mxu1 %v4402_v10 }
 0x45b   :  { %2917 = vmatpush1.bf16.msra.mxu0 %v4399_v35 }
 0x45c   :  { %2999 = vmatpush1.bf16.msra.mxu1 %v4401_v43  ;;  %2918 = vmatprep.subr.bf16.mxu0 %v4408_v41 }
 0x45d   :  { %3000 = vmatprep.subr.bf16.mxu1 %v4410_v46 }
 0x45f   :  { %2919 = vmatpush1.bf16.msra.mxu0 %v4407_v51 }
 0x460   :  { %3001 = vmatpush1.bf16.msra.mxu1 %v4409_v52  ;;  %2920 = vmatprep.subr.bf16.mxu0 %v4416_v53 }
 0x461   :  { %3002 = vmatprep.subr.bf16.mxu1 %v4418_v54 }
 0x463   :  { %2921 = vmatpush1.bf16.msra.mxu0 %v4415_v59 }
 0x464   :  { %3003 = vmatpush1.bf16.msra.mxu1 %v4417_v60  ;;  %2922 = vmatprep.subr.bf16.mxu0 %v4424_v61 }
 0x465   :  { %3004 = vmatprep.subr.bf16.mxu1 %v4426_v62 }
 0x467   :  { %2923 = vmatpush1.bf16.msra.mxu0 %v4423_v39 }
 0x468   :  { %3005 = vmatpush1.bf16.msra.mxu1 %v4425_v5  ;;  %2924 = vmatprep.subr.bf16.mxu0 %v4432_v6 }
 0x469   :  { %3006 = vmatprep.subr.bf16.mxu1 %v4434_v7 }
 0x46b   :  { %2925 = vmatpush1.bf16.msra.mxu0 %v4431_v11 }
 0x46c   :  { %3007 = vmatpush1.bf16.msra.mxu1 %v4433_v8  ;;  %2926 = vmatprep.subr.bf16.mxu0 %v4440_v12 }
 0x46d   :  { %3008 = vmatprep.subr.bf16.mxu1 %v4442_v32 }
 0x46f   :  { %2927 = vmatpush1.bf16.msra.mxu0 %v4439_v14 }
 0x470   :  { %3009 = vmatpush1.bf16.msra.mxu1 %v4441_v15  ;;  %2928 = vmatprep.subr.bf16.mxu0 %v4448_v16 }
 0x471   :  { %3010 = vmatprep.subr.bf16.mxu1 %v4450_v18 }
 0x473   :  { %2929 = vmatpush1.bf16.msra.mxu0 %v4447_v20 }
 0x474   :  { %3011 = vmatpush1.bf16.msra.mxu1 %v4449_v22 }
 0x476   :  { %2931 = vmatmul.mubr.bf16.vlgmr.msra.gmra.mrb[12].mxu0 %v5480_v2 }
 0x477   :  { %3013 = vmatmul.mubr.bf16.vlgmr.msra.gmra.mrb[12].mxu1 %v5480_v2 }
 0x4c9   :  { %v5492_v38 = vpop.f32.mrb[8].mxu0  ;;  %v5494_v23 = vpop.f32.mrb[8].mxu1 }
 0x4ca   :  { %v3021_v24 = vrot.slane %v5492_v38, 4  ;;  %v3069_v26 = vmul.f32 %v5492_v38, %v5492_v38  ;;  %v3033_v3 = vrot.slane %v5494_v23, 4  ;;  %v3071_v9 = vmul.f32 %v5494_v23, %v5494_v23  ;;  %v5502_v10 = vpop.f32.mrb[9].mxu0  ;;  %v5504_v27 = vpop.f32.mrb[9].mxu1 }
 0x4cb   :  { %v3027_v2 = vrot.slane %v5502_v10, 4  ;;  %v3070_v28 = vmul.f32 %v5502_v10, %v5502_v10  ;;  %v3039_v29 = vrot.slane %v5504_v27, 4  ;;  %v3072_v30 = vmul.f32 %v5504_v27, %v5504_v27  ;;  %v2772_v35 = vpop.f32.mrb[10].mxu0  ;;  %v2854_v43 = vpop.f32.mrb[10].mxu1 }
 0x4cc   :  { %v3022_v41 = vadd.f32 %v3021_v24, %v5492_v38  ;;  %v3077_v46 = vrot.slane %v3069_v26, 4  ;;  %v3034_v47 = vadd.f32 %v3033_v3, %v5494_v23  ;;  %v3089_v48 = vrot.slane %v3071_v9, 4  ;;  %v2773_v49 = vpop.f32.mrb[11].mxu0  ;;  %v2855_v50 = vpop.f32.mrb[11].mxu1 }
 0x4cd   :  { %v3028_v51 = vadd.f32 %v3027_v2, %v5502_v10  ;;  %v3083_v52 = vrot.slane %v3070_v28, 4  ;;  %v3040_v53 = vadd.f32 %v3039_v29, %v5504_v27  ;;  %v3095_v54 = vrot.slane %v3072_v30, 4 }
 0x4ce   :  { %v3023_v55 = vrot.slane %v3022_v41, 2  ;;  %v3078_v56 = vadd.f32 %v3077_v46, %v3069_v26  ;;  %v3035_v57 = vrot.slane %v3034_v47, 2  ;;  %v3090_v58 = vadd.f32 %v3089_v48, %v3071_v9 }
 0x4cf   :  { %v3029_v59 = vrot.slane %v3028_v51, 2  ;;  %v3084_v60 = vadd.f32 %v3083_v52, %v3070_v28  ;;  %v3041_v61 = vrot.slane %v3040_v53, 2  ;;  %v3096_v62 = vadd.f32 %v3095_v54, %v3072_v30 }
 0x4d0   :  { %v3024_v63 = vadd.f32 %v3023_v55, %v3022_v41  ;;  %v3079_v0 = vrot.slane %v3078_v56, 2  ;;  %v3036_v42 = vadd.f32 %v3035_v57, %v3034_v47  ;;  %v3091_v1 = vrot.slane %v3090_v58, 2 }
 0x4d1   :  { %v3030_v39 = vadd.f32 %v3029_v59, %v3028_v51  ;;  %v3085_v5 = vrot.slane %v3084_v60, 2  ;;  %v3042_v6 = vadd.f32 %v3041_v61, %v3040_v53  ;;  %v3097_v7 = vrot.slane %v3096_v62, 2  ;;  %v5523_v61 = vld [vmem:[%s5640_s10] sm:$0xff] }
 0x4d2   :  { %v3025_v31 = vrot.slane %v3024_v63, 1  ;;  %v3080_v33 = vadd.f32 %v3079_v0, %v3078_v56  ;;  %v3037_v25 = vrot.slane %v3036_v42, 1  ;;  %v3092_v36 = vadd.f32 %v3091_v1, %v3090_v58  ;;  %v4777_v0 = vld [vmem:[#allocation15] sm:$0xff]  }
 0x4d3   :  { %v3031_v11 = vrot.slane %v3030_v39, 1  ;;  %v3086_v8 = vadd.f32 %v3085_v5, %v3084_v60  ;;  %v3043_v12 = vrot.slane %v3042_v6, 1  ;;  %v3098_v32 = vadd.f32 %v3097_v7, %v3096_v62  ;;  %v4775_v62 = vld [vmem:[#allocation15 + $0x40] sm:$0xff]   ;;  %v4780_v7 = vld [vmem:[#allocation15 + $0xc8] sm:$0xff]  }
 0x4d4   :  { %v3026_v13 = vadd.f32 %v3025_v31, %v3024_v63  ;;  %v3081_v34 = vrot.slane %v3080_v33, 1  ;;  %v3038_v4 = vadd.f32 %v3037_v25, %v3036_v42  ;;  %v3093_v37 = vrot.slane %v3092_v36, 1  ;;  %v4776_v63 = vld [vmem:[#allocation15 + $0xc0] sm:$0xff]   ;;  %4519 = vmatprep.subr.bf16.mxu0 %v4775_v62  ;;  %v4781_v25 = vld [vmem:[#allocation15 + $0x8] sm:$0xff]  }
 0x4d5   :  { %v3032_v14 = vadd.f32 %v3031_v11, %v3030_v39  ;;  %v3087_v15 = vrot.slane %v3086_v8, 1  ;;  %v3044_v16 = vadd.f32 %v3043_v12, %v3042_v6  ;;  %v3099_v18 = vrot.slane %v3098_v32, 1  ;;  %v4778_v42 = vld [vmem:[#allocation15 + $0x80] sm:$0xff]   ;;  %4541 = vmatprep.subr.bf16.mxu1 %v4776_v63  ;;  %4520 = vmatpush3.bf16.msra.mxu0 %v4777_v0  ;;  %v4779_v6 = vld [vmem:[#allocation15 + $0x48] sm:$0xff]  }
 0x4d6   :  { %v3082_v20 = vadd.f32 %v3081_v34, %v3080_v33  ;;  %v3125_v22 = vmul.f32 0.125, %v3026_v13  ;;  %v3094_v24 = vadd.f32 %v3093_v37, %v3092_v36  ;;  %v3127_v26 = vmul.f32 0.125, %v3038_v4  ;;  %4542 = vmatpush3.bf16.msra.mxu1 %v4778_v42  ;;  %v4782_v36 = vld [vmem:[#allocation15 + $0x88] sm:$0xff]   ;;  %4521 = vmatprep.subr.bf16.mxu0 %v4779_v6  ;;  %v4783_v37 = vld [vmem:[#allocation15 + $0x50] sm:$0xff]   ;;  %v4807_v62 = vld [vmem:[#allocation15 + $0x140] sm:$0xff]  }
 0x4d7   :  { %v3088_v3 = vadd.f32 %v3087_v15, %v3086_v8  ;;  %v3126_v9 = vmul.f32 0.125, %v3032_v14  ;;  %v3100_v2 = vadd.f32 %v3099_v18, %v3098_v32  ;;  %v5516_v28 = vmul.f32 0.125, %v3044_v16  ;;  %4543 = vmatprep.subr.bf16.mxu1 %v4780_v7  ;;  %v4784_v14 = vld [vmem:[#allocation15 + $0xd0] sm:$0xff]   ;;  %v4808_v63 = vld [vmem:[#allocation15 + $0x1c0] sm:$0xff]  }
 0x4d8   :  { %v3133_v29 = vmul.f32 0.125, %v3082_v20  ;;  %v3141_v30 = vmul.f32 %v3125_v22, %v3125_v22  ;;  %v3135_v35 = vmul.f32 0.125, %v3094_v24  ;;  %v3143_v43 = vmul.f32 %v3127_v26, %v3127_v26  ;;  %v4785_v18 = vld [vmem:[#allocation15 + $0x10] sm:$0xff]  }
 0x4d9   :  { %v3134_v41 = vmul.f32 0.125, %v3088_v3  ;;  %v3142_v46 = vmul.f32 %v3126_v9, %v3126_v9  ;;  %v3136_v47 = vmul.f32 0.125, %v3100_v2  ;;  %v3144_v48 = vmul.f32 %v5516_v28, %v5516_v28  ;;  %4522 = vmatpush3.bf16.msra.mxu0 %v4781_v25  ;;  %v4786_v20 = vld [vmem:[#allocation15 + $0x90] sm:$0xff]   ;;  %v4787_v2 = vld [vmem:[#allocation15 + $0x58] sm:$0xff]  }
 0x4da   :  { %v3149_v49 = vsub.f32 %v3133_v29, %v3141_v30  ;;  %v3151_v50 = vsub.f32 %v3135_v35, %v3143_v43  ;;  %v3186_v1 = vrot.slane %v5523_v61, %v5362_v19  ;;  %v3194_v39 = vrot.slane %v5523_v61, %v5433_v44  ;;  %4544 = vmatpush3.bf16.msra.mxu1 %v4782_v36  ;;  %v4788_v29 = vld [vmem:[#allocation15 + $0xd8] sm:$0xff]  }
 0x4db   :  { %v3150_v51 = vsub.f32 %v3134_v41, %v3142_v46  ;;  %v3152_v52 = vsub.f32 %v3136_v47, %v3144_v48  ;;  %v3190_v5 = vrot.slane %v5523_v61, %v5368_v21  ;;  %v3198_v33 = vrot.slane %v5523_v61, %v5436_v45  ;;  %4523 = vmatprep.subr.bf16.mxu0 %v4783_v37  ;;  %v4789_v35 = vld [vmem:[#allocation15 + $0x18] sm:$0xff]   ;;  %v4791_v41 = vld [vmem:[#allocation15 + $0x60] sm:$0xff]  }
 0x4dc   :  { %v3157_v53 = vmax.f32 %v3149_v49, 0.0  ;;  %v3159_v54 = vmax.f32 %v3151_v50, 0.0  ;;  %4545 = vmatprep.subr.bf16.mxu1 %v4784_v14  ;;  %v4790_v43 = vld [vmem:[#allocation15 + $0x98] sm:$0xff]   ;;  %v4793_v47 = vld [vmem:[#allocation15 + $0x20] sm:$0xff]   ;;  %v4795_v49 = vld [vmem:[#allocation15 + $0x68] sm:$0xff]  }
 0x4dd   :  { %v3158_v55 = vmax.f32 %v3150_v51, 0.0  ;;  %v3160_v56 = vmax.f32 %v3152_v52, 0.0  ;;  %4524 = vmatpush3.bf16.msra.mxu0 %v4785_v18  ;;  %v4794_v48 = vld [vmem:[#allocation15 + $0xa0] sm:$0xff]   ;;  %v4796_v50 = vld [vmem:[#allocation15 + $0xe8] sm:$0xff]  }
 0x4de   :  { %v3165_v57 = vadd.f32 0.8, %v3157_v53  ;;  %v3167_v58 = vadd.f32 0.8, %v3159_v54  ;;  %4546 = vmatpush3.bf16.msra.mxu1 %v4786_v20  ;;  %4525 = vmatprep.subr.bf16.mxu0 %v4787_v2  ;;  %v4797_v51 = vld [vmem:[#allocation15 + $0x28] sm:$0xff]   ;;  %v4799_v53 = vld [vmem:[#allocation15 + $0x70] sm:$0xff]  }
 0x4df   :  { %v3166_v59 = vadd.f32 0.8, %v3158_v55  ;;  %v3168_v60 = vadd.f32 0.8, %v3160_v56  ;;  %4547 = vmatprep.subr.bf16.mxu1 %v4788_v29  ;;  %v4798_v52 = vld [vmem:[#allocation15 + $0xa8] sm:$0xff]   ;;  %v4800_v54 = vld [vmem:[#allocation15 + $0xf0] sm:$0xff]  }
 0x4e0   :  { %4851 = vrsqrt.f32 %v3165_v57  ;;  %v4801_v55 = vld [vmem:[#allocation15 + $0x30] sm:$0xff]   ;;  %v4803_v57 = vld [vmem:[#allocation15 + $0x78] sm:$0xff]  }
 0x4e1   :  { %4853 = vrsqrt.f32 %v3167_v58  ;;  %4526 = vmatpush3.bf16.msra.mxu0 %v4789_v35  ;;  %v4802_v56 = vld [vmem:[#allocation15 + $0xb0] sm:$0xff]   ;;  %v4804_v58 = vld [vmem:[#allocation15 + $0xf8] sm:$0xff]  }
 0x4e2   :  { %4855 = vrsqrt.f32 %v3166_v59  ;;  %4548 = vmatpush3.bf16.msra.mxu1 %v4790_v43  ;;  %4527 = vmatprep.subr.bf16.mxu0 %v4791_v41  ;;  %v4805_v59 = vld [vmem:[#allocation15 + $0x38] sm:$0xff]  }
 0x4e3   :  { %4857 = vrsqrt.f32 %v3168_v60  ;;  %v4806_v60 = vld [vmem:[#allocation15 + $0xb8] sm:$0xff]  }
 0x4e5   :  { %4528 = vmatpush3.bf16.msra.mxu0 %v4793_v47 }
 0x4e6   :  { %4529 = vmatprep.subr.bf16.mxu0 %v4795_v49 }
 0x4e9   :  { %4530 = vmatpush3.bf16.msra.mxu0 %v4797_v51 }
 0x4ea   :  { %v4852_v31 = vpop.eup %4851  ;;  %4531 = vmatprep.subr.bf16.mxu0 %v4799_v53 }
 0x4eb   :  { %v4854_v11 = vpop.eup %4853  ;;  %v5533_v8 = vmul.f32 %v4852_v31, %v3186_v1 }
 0x4ec   :  { %v4856_v12 = vpop.eup %4855  ;;  %v5535_v32 = vmul.f32 %v4854_v11, %v3194_v39 }
 0x4ed   :  { %v4858_v13 = vpop.eup %4857  ;;  %v3232_v34 = vmul.f32 %v5533_v8, %v3125_v22  ;;  %v5538_v4 = vmul.f32 %v4856_v12, %v3190_v5  ;;  %4532 = vmatpush3.bf16.msra.mxu0 %v4801_v55 }
 0x4ee   :  { %v3234_v15 = vmul.f32 %v5535_v32, %v3127_v26  ;;  %v5541_v16 = vmul.f32 %v4858_v13, %v3198_v33  ;;  %4533 = vmatprep.subr.bf16.mxu0 %v4803_v57 }
 0x4ef   :  { %v3233_v24 = vmul.f32 %v5538_v4, %v3126_v9 }
 0x4f0   :  { %v3235_v3 = vmul.f32 %v5541_v16, %v5516_v28  ;;  %v4792_v28 = vld [vmem:[#allocation15 + $0xe0] sm:$0xff]  }
 0x4f1   :  { %v3248_v22 = vcombine.low %v3232_v34, %v3233_v24  ;;  %4549 = vmatprep.subr.bf16.mxu1 %v4792_v28  ;;  %4534 = vmatpush3.bf16.msra.mxu0 %v4805_v59 }
 0x4f2   :  { %v3249_v30 = vcombine.low %v3234_v15, %v3235_v3  ;;  %4550 = vmatpush3.bf16.msra.mxu1 %v4794_v48  ;;  %4563 = vmatprep.subr.bf16.mxu0 %v4807_v62 }
 0x4f3   :  { %v5547_v26 = vrot.slane %v3248_v22, %v5373_v40  ;;  %4551 = vmatprep.subr.bf16.mxu1 %v4796_v50 }
 0x4f4   :  { %v5550_v9 = vrot.slane %v3249_v30, %v5373_v40 }
 0x4f6   :  { %v3280_v46 = vcombine.low %v5547_v26, %v5550_v9  ;;  %4552 = vmatpush3.bf16.msra.mxu1 %v4798_v52 }
 0x4f7   :  { %4553 = vmatprep.subr.bf16.mxu1 %v4800_v54 }
 0x4fa   :  { %4554 = vmatpush3.bf16.msra.mxu1 %v4802_v56 }
 0x4fb   :  { %4555 = vmatprep.subr.bf16.mxu1 %v4804_v58 }
 0x4fe   :  { %4556 = vmatpush3.bf16.msra.mxu1 %v4806_v60 }
 0x4ff   :  { %4585 = vmatprep.subr.bf16.mxu1 %v4808_v63 }
 0x549   :  { %v5554_v0 = vpop.f32.mrb[12].mxu0 }
 0x54a   :  { %v3045_v42 = vrot.slane %v5554_v0, 4  ;;  %v3073_v1 = vmul.f32 %v5554_v0, %v5554_v0  ;;  %v5559_v39 = vpop.f32.mrb[12].mxu1  ;;  %v5561_v5 = vpop.f32.mrb[13].mxu0 }
 0x54b   :  { %v3057_v6 = vrot.slane %v5559_v39, 4  ;;  %v3075_v7 = vmul.f32 %v5559_v39, %v5559_v39  ;;  %v3051_v31 = vrot.slane %v5561_v5, 4  ;;  %v3074_v33 = vmul.f32 %v5561_v5, %v5561_v5  ;;  %v5569_v25 = vpop.f32.mrb[13].mxu1  ;;  %v2936_v36 = vpop.f32.mrb[14].mxu0 }
 0x54c   :  { %v3046_v11 = vadd.f32 %v3045_v42, %v5554_v0  ;;  %v3101_v12 = vrot.slane %v3073_v1, 4  ;;  %v3063_v13 = vrot.slane %v5569_v25, 4  ;;  %v3076_v34 = vmul.f32 %v5569_v25, %v5569_v25  ;;  %v3018_v37 = vpop.f32.mrb[14].mxu1  ;;  %v2937_v14 = vpop.f32.mrb[15].mxu0 }
 0x54d   :  { %v3058_v15 = vadd.f32 %v3057_v6, %v5559_v39  ;;  %v3113_v18 = vrot.slane %v3075_v7, 4  ;;  %v3052_v20 = vadd.f32 %v3051_v31, %v5561_v5  ;;  %v3107_v24 = vrot.slane %v3074_v33, 4  ;;  %v3019_v3 = vpop.f32.mrb[15].mxu1 }
 0x54e   :  { %v3047_v22 = vrot.slane %v3046_v11, 2  ;;  %v3102_v2 = vadd.f32 %v3101_v12, %v3073_v1  ;;  %v3064_v29 = vadd.f32 %v3063_v13, %v5569_v25  ;;  %v3119_v30 = vrot.slane %v3076_v34, 4 }
 0x54f   :  { %v3059_v35 = vrot.slane %v3058_v15, 2  ;;  %v3114_v43 = vadd.f32 %v3113_v18, %v3075_v7  ;;  %v3053_v41 = vrot.slane %v3052_v20, 2  ;;  %v3108_v28 = vadd.f32 %v3107_v24, %v3074_v33 }
 0x550   :  { %v3048_v47 = vadd.f32 %v3047_v22, %v3046_v11  ;;  %v3103_v48 = vrot.slane %v3102_v2, 2  ;;  %v3065_v49 = vrot.slane %v3064_v29, 2  ;;  %v3120_v50 = vadd.f32 %v3119_v30, %v3076_v34 }
 0x551   :  { %v3060_v51 = vadd.f32 %v3059_v35, %v3058_v15  ;;  %v3115_v52 = vrot.slane %v3114_v43, 2  ;;  %v3054_v53 = vadd.f32 %v3053_v41, %v3052_v20  ;;  %v3109_v54 = vrot.slane %v3108_v28, 2 }
 0x552   :  { %v3049_v55 = vrot.slane %v3048_v47, 1  ;;  %v3104_v56 = vadd.f32 %v3103_v48, %v3102_v2  ;;  %v3066_v57 = vadd.f32 %v3065_v49, %v3064_v29  ;;  %v3121_v58 = vrot.slane %v3120_v50, 2 }
 0x553   :  { %v3061_v59 = vrot.slane %v3060_v51, 1  ;;  %v3116_v60 = vadd.f32 %v3115_v52, %v3114_v43  ;;  %v3055_v62 = vrot.slane %v3054_v53, 1  ;;  %v3110_v63 = vadd.f32 %v3109_v54, %v3108_v28 }
 0x554   :  { %v3050_v42 = vadd.f32 %v3049_v55, %v3048_v47  ;;  %v3105_v1 = vrot.slane %v3104_v56, 1  ;;  %v3067_v6 = vrot.slane %v3066_v57, 1  ;;  %v3122_v7 = vadd.f32 %v3121_v58, %v3120_v50 }
 0x555   :  { %v3062_v31 = vadd.f32 %v3061_v59, %v3060_v51  ;;  %v3117_v33 = vrot.slane %v3116_v60, 1  ;;  %v3056_v36 = vadd.f32 %v3055_v62, %v3054_v53  ;;  %v3111_v11 = vrot.slane %v3110_v63, 1 }
 0x556   :  { %v3106_v12 = vadd.f32 %v3105_v1, %v3104_v56  ;;  %v3129_v13 = vmul.f32 0.125, %v3050_v42  ;;  %v3068_v34 = vadd.f32 %v3067_v6, %v3066_v57  ;;  %v3123_v37 = vrot.slane %v3122_v7, 1 }
 0x557   :  { %v3118_v14 = vadd.f32 %v3117_v33, %v3116_v60  ;;  %v3131_v15 = vmul.f32 0.125, %v3062_v31  ;;  %v3112_v18 = vadd.f32 %v3111_v11, %v3110_v63  ;;  %v3130_v20 = vmul.f32 0.125, %v3056_v36 }
 0x558   :  { %v3137_v24 = vmul.f32 0.125, %v3106_v12  ;;  %v3145_v3 = vmul.f32 %v3129_v13, %v3129_v13  ;;  %v3124_v22 = vadd.f32 %v3123_v37, %v3122_v7  ;;  %v3132_v2 = vmul.f32 0.125, %v3068_v34 }
 0x559   :  { %v3139_v29 = vmul.f32 0.125, %v3118_v14  ;;  %v3147_v30 = vmul.f32 %v3131_v15, %v3131_v15  ;;  %v3138_v35 = vmul.f32 0.125, %v3112_v18  ;;  %v3146_v43 = vmul.f32 %v3130_v20, %v3130_v20 }
 0x55a   :  { %v3153_v41 = vsub.f32 %v3137_v24, %v3145_v3  ;;  %v3140_v28 = vmul.f32 0.125, %v3124_v22  ;;  %v3148_v47 = vmul.f32 %v3132_v2, %v3132_v2  ;;  %v3201_v59 = vsub.s32 4, %v5359_v17 }
 0x55b   :  { %v3155_v48 = vsub.f32 %v3139_v29, %v3147_v30  ;;  %v3154_v49 = vsub.f32 %v3138_v35, %v3146_v43  ;;  %v3209_v60 = vsub.s32 6, %v5359_v17  ;;  %v3205_v62 = vsub.s32 5, %v5359_v17 }
 0x55c   :  { %v3161_v50 = vmax.f32 %v3153_v41, 0.0  ;;  %v3156_v51 = vsub.f32 %v3140_v28, %v3148_v47  ;;  %v3213_v63 = vsub.s32 7, %v5359_v17  ;;  %v3202_v42 = vrot.slane %v5523_v61, %v3201_v59 }
 0x55d   :  { %v3163_v52 = vmax.f32 %v3155_v48, 0.0  ;;  %v3162_v53 = vmax.f32 %v3154_v49, 0.0  ;;  %v3210_v1 = vrot.slane %v5523_v61, %v3209_v60  ;;  %v3206_v6 = vrot.slane %v5523_v61, %v3205_v62 }
 0x55e   :  { %v3169_v54 = vadd.f32 0.8, %v3161_v50  ;;  %v3164_v55 = vmax.f32 %v3156_v51, 0.0  ;;  %v3214_v31 = vrot.slane %v5523_v61, %v3213_v63  ;;  %v3302_v61 = vrot.slane %v5533_v8, %v5362_v19 }
 0x55f   :  { %v3171_v56 = vadd.f32 0.8, %v3163_v52  ;;  %v3170_v57 = vadd.f32 0.8, %v3162_v53  ;;  %v3310_v41 = vrot.slane %v5535_v32, %v5362_v19  ;;  %v3231_v32 = vld [vmem:[#allocation13] sm:$0xff] }
 0x560   :  { %4859 = vrsqrt.f32 %v3169_v54  ;;  %v3172_v58 = vadd.f32 0.8, %v3164_v55  ;;  %v3331_v49 = vmul.f32 %v3302_v61, %v5492_v38  ;;  %v4818_v61 = vld [vmem:[#allocation15 + $0x190] sm:$0xff]  }
 0x561   :  { %4861 = vrsqrt.f32 %v3171_v56  ;;  %v3333_v26 = vmul.f32 %v3310_v41, %v5494_v23  ;;  %v4819_v41 = vld [vmem:[#allocation15 + $0x158] sm:$0xff]  }
 0x562   :  { %4863 = vrsqrt.f32 %v3170_v57 }
 0x563   :  { %4865 = vrsqrt.f32 %v3172_v58 }
 0x56a   :  { %v4860_v7 = vpop.eup %4859 }
 0x56b   :  { %v4862_v33 = vpop.eup %4861  ;;  %v3227_v36 = vmul.f32 %v4860_v7, %v3202_v42 }
 0x56c   :  { %v4864_v11 = vpop.eup %4863  ;;  %v3229_v12 = vmul.f32 %v4862_v33, %v3210_v1  ;;  %v4809_v33 = vld [vmem:[#allocation15 + $0x100] sm:$0xff]  }
 0x56d   :  { %v4866_v34 = vpop.eup %4865  ;;  %v3236_v37 = vmul.f32 %v3227_v36, %v3129_v13  ;;  %v3228_v14 = vmul.f32 %v4864_v11, %v3206_v6  ;;  %v3306_v13 = vrot.slane %v5538_v4, %v5362_v19  ;;  %v3318_v28 = vrot.slane %v3227_v36, %v5362_v19  ;;  %v4810_v36 = vld [vmem:[#allocation15 + $0x180] sm:$0xff]  }
 0x56e   :  { %v3238_v18 = vmul.f32 %v3229_v12, %v3131_v15  ;;  %v3230_v24 = vmul.f32 %v4866_v34, %v3214_v31  ;;  %v3288_v15 = vrot.slane %v3280_v46, %v5373_v40  ;;  %v3326_v8 = vrot.slane %v3229_v12, %v5362_v19 }
 0x56f   :  { %v3237_v3 = vmul.f32 %v3228_v14, %v3130_v20  ;;  %v3314_v20 = vrot.slane %v5541_v16, %v5362_v19  ;;  %v3322_v47 = vrot.slane %v3228_v14, %v5362_v19  ;;  %v3332_v9 = vmul.f32 %v3306_v13, %v5502_v10  ;;  %v4820_v13 = vld [vmem:[#allocation15 + $0x1d8] sm:$0xff]  }
 0x570   :  { %v3239_v17 = vmul.f32 %v3230_v24, %v3132_v2  ;;  %v3330_v48 = vrot.slane %v3230_v24, %v5362_v19  ;;  %v3337_v50 = vmul.f32 %v3326_v8, %v5559_v39  ;;  %v4825_v8 = vld [vmem:[#allocation15 + $0x120] sm:$0xff]  }
 0x571   :  { %v3250_v22 = vcombine.low %v3236_v37, %v3237_v3  ;;  %v3334_v16 = vmul.f32 %v3314_v20, %v5504_v27  ;;  %v3336_v51 = vmul.f32 %v3322_v47, %v5561_v5  ;;  %v4811_v37 = vld [vmem:[#allocation15 + $0x148] sm:$0xff]   ;;  %v4822_v20 = vld [vmem:[#allocation15 + $0x198] sm:$0xff]   ;;  %v4826_v47 = vld [vmem:[#allocation15 + $0x1a0] sm:$0xff]  }
 0x572   :  { %v3251_v29 = vcombine.low %v3238_v18, %v3239_v17  ;;  %v3338_v52 = vmul.f32 %v3330_v48, %v5569_v25  ;;  %v4812_v18 = vld [vmem:[#allocation15 + $0x1c8] sm:$0xff]  }
 0x573   :  { %v3272_v30 = vrot.slane %v3250_v22, %v5373_v40  ;;  %v4813_v17 = vld [vmem:[#allocation15 + $0x108] sm:$0xff]  }
 0x574   :  { %v3279_v35 = vrot.slane %v3251_v29, %v5373_v40  ;;  %v4814_v22 = vld [vmem:[#allocation15 + $0x188] sm:$0xff]  }
 0x575   :  { %v4828_v48 = vld [vmem:[#allocation15 + $0x1e8] sm:$0xff]  }
 0x576   :  { %v3281_v43 = vcombine.low %v3272_v30, %v3279_v35  ;;  %v4815_v30 = vld [vmem:[#allocation15 + $0x150] sm:$0xff]  }
 0x577   :  { %v4816_v35 = vld [vmem:[#allocation15 + $0x1d0] sm:$0xff]  }
 0x578   :  { %v3295_v2 = vrot.slane %v3281_v43, %v5373_v40  ;;  %v3335_v40 = vmul.f32 %v3318_v28, %v5554_v0  ;;  %v4817_v43 = vld [vmem:[#allocation15 + $0x110] sm:$0xff]   ;;  %v4824_v28 = vld [vmem:[#allocation15 + $0x1e0] sm:$0xff]  }
 0x57a   :  { %v3296_v4 = vcombine.low %v3288_v15, %v3295_v2  ;;  %v4821_v15 = vld [vmem:[#allocation15 + $0x118] sm:$0xff]   ;;  %v4823_v2 = vld [vmem:[#allocation15 + $0x160] sm:$0xff]  }
 0x57c   :  { %v3298_v46 = vsub.f32 %v3231_v32, %v3296_v4  ;;  %v4827_v32 = vld [vmem:[#allocation15 + $0x168] sm:$0xff]  }
 0x57d   :  { %v4829_v4 = vld [vmem:[#allocation15 + $0x128] sm:$0xff]  }
 0x57e   :  { %v3371_v53 = vrot.slane %v3298_v46, %v3213_v63  ;;  %v3347_v54 = vrot.slane %v3298_v46, %v5368_v21  ;;  %v3355_v38 = vrot.slane %v3298_v46, %v5436_v45  ;;  %v3343_v23 = vrot.slane %v3298_v46, %v5362_v19 }
 0x57f   :  { %v3351_v10 = vrot.slane %v3298_v46, %v5433_v44  ;;  %v3363_v55 = vrot.slane %v3298_v46, %v3205_v62  ;;  %v3359_v27 = vrot.slane %v3298_v46, %v3201_v59  ;;  %v3367_v56 = vrot.slane %v3298_v46, %v3209_v60  ;;  %v4834_v46 = vld [vmem:[#allocation15 + $0x1b0] sm:$0xff]  }
 0x580   :  { %v3387_v57 = vadd.f32 %v3371_v53, %v3338_v52  ;;  %v3381_v0 = vadd.f32 %v3347_v54, %v3332_v9  ;;  %v3383_v58 = vadd.f32 %v3355_v38, %v3334_v16  ;;  %v3380_v39 = vadd.f32 %v3343_v23, %v3331_v49  ;;  %v4830_v49 = vld [vmem:[#allocation15 + $0x1a8] sm:$0xff]   ;;  %v4832_v9 = vld [vmem:[#allocation15 + $0x1f0] sm:$0xff]   ;;  %v4837_v53 = vld [vmem:[#allocation15 + $0x138] sm:$0xff]  }
 0x581   :  { %v3382_v42 = vadd.f32 %v3351_v10, %v3333_v26  ;;  %v3385_v5 = vadd.f32 %v3363_v55, %v3336_v51  ;;  %v5617_v1 = vadd.f32 %v3359_v27, %v3335_v40  ;;  %v5619_v25 = vadd.f32 %v3367_v56, %v3337_v50  ;;  %v4831_v26 = vld [vmem:[#allocation15 + $0x170] sm:$0xff]   ;;  %v4835_v40 = vld [vmem:[#allocation15 + $0x178] sm:$0xff]  }
 0x582   :  { %vm3389_vm9 = vcmp.ge.f32.partialorder %v3381_v0, 0.0  ;;  %v3397_v21 = vmul.f32 0.2, %v3381_v0  ;;  %vm3391_vm10 = vcmp.ge.f32.partialorder %v3383_v58, 0.0  ;;  %v3399_v45 = vmul.f32 0.2, %v3383_v58 }
 0x583   :  { %vm3388_vm11 = vcmp.ge.f32.partialorder %v3380_v39, 0.0  ;;  %v3396_v19 = vmul.f32 0.2, %v3380_v39  ;;  %vm3390_vm12 = vcmp.ge.f32.partialorder %v3382_v42, 0.0  ;;  %v3398_v44 = vmul.f32 0.2, %v3382_v42 }
 0x584   :  { %v3405_v59 = vsel %vm3389_vm9, %v3381_v0, %v3397_v21  ;;  %v3407_v60 = vsel %vm3391_vm10, %v3383_v58, %v3399_v45  ;;  %vm3393_vm13 = vcmp.ge.f32.partialorder %v3385_v5, 0.0  ;;  %v3401_v62 = vmul.f32 0.2, %v3385_v5  ;;  %v4833_v16 = vld [vmem:[#allocation15 + $0x130] sm:$0xff]   ;;  %v4836_v50 = vld [vmem:[#allocation15 + $0x1f8] sm:$0xff]  }
 0x585   :  { %v3413_v63 = vpack.c.bf16 %v3405_v59, %v3405_v59  ;;  %v3415_v6 = vpack.c.bf16 %v3407_v60, %v3407_v60  ;;  %v3404_v7 = vsel %vm3388_vm11, %v3380_v39, %v3396_v19  ;;  %v3406_v31 = vsel %vm3390_vm12, %v3382_v42, %v3398_v44  ;;  %v4838_v54 = vld [vmem:[#allocation15 + $0x1b8] sm:$0xff]  }
 0x586   :  { %v3412_v11 = vpack.c.bf16 %v3404_v7, %v3404_v7  ;;  %v3414_v12 = vpack.c.bf16 %v3406_v31, %v3406_v31  ;;  %v3409_v34 = vsel %vm3393_vm13, %v3385_v5, %v3401_v62  ;;  %vm3395_vm14 = vcmp.ge.f32.partialorder %v3387_v57, 0.0 }
 0x587   :  { %3971 = vmatprep.mubr.bf16.mxu0 %v3413_v63  ;;  %4011 = vmatprep.mubr.bf16.mxu1 %v3415_v6  ;;  %v3403_v14 = vmul.f32 0.2, %v3387_v57  ;;  %v3417_v24 = vpack.c.bf16 %v3409_v34, %v3409_v34  ;;  %v3400_v51 = vmul.f32 0.2, %v5617_v1  ;;  %v3402_v52 = vmul.f32 0.2, %v5619_v25 }
 0x588   :  { %3972 = vmatmul.mubr.bf16.vlgmr.msra.gmra.mrb[16].mxu0 %v3412_v11  ;;  %4012 = vmatmul.mubr.bf16.vlgmr.msra.gmra.mrb[16].mxu1 %v3414_v12  ;;  %vm3392_vm15 = vcmp.ge.f32.partialorder %v5617_v1, 0.0  ;;  %vm3394_vm0 = vcmp.ge.f32.partialorder %v5619_v25, 0.0 }
 0x589   :  { %4564 = vmatpush3.bf16.msra.mxu0 %v4809_v33  ;;  %4586 = vmatpush3.bf16.msra.mxu1 %v4810_v36  ;;  %v3411_v3 = vsel %vm3395_vm14, %v3387_v57, %v3403_v14  ;;  %v3408_v38 = vsel %vm3392_vm15, %v5617_v1, %v3400_v51  ;;  %v3410_v23 = vsel %vm3394_vm0, %v5619_v25, %v3402_v52  ;;  %v4451_v57 = vld [vmem:[#allocation16] ss:$0 sm:$0xff] }
 0x58a   :  { %4051 = vmatprep.mubr.bf16.mxu0 %v3417_v24  ;;  %v3419_v29 = vpack.c.bf16 %v3411_v3, %v3411_v3  ;;  %4565 = vmatprep.subr.bf16.mxu0 %v4811_v37  ;;  %v3416_v10 = vpack.c.bf16 %v3408_v38, %v3408_v38  ;;  %v3418_v55 = vpack.c.bf16 %v3410_v23, %v3410_v23 }
 0x58b   :  { %4587 = vmatprep.subr.bf16.mxu1 %v4812_v18 }
 0x58c   :  { %4091 = vmatprep.mubr.bf16.mxu1 %v3419_v29 }
 0x58d   :  { %4566 = vmatpush3.bf16.msra.mxu0 %v4813_v17  ;;  %4588 = vmatpush3.bf16.msra.mxu1 %v4814_v22 }
 0x58e   :  { %4567 = vmatprep.subr.bf16.mxu0 %v4815_v30  ;;  %4589 = vmatprep.subr.bf16.mxu1 %v4816_v35 }
 0x591   :  { %4568 = vmatpush3.bf16.msra.mxu0 %v4817_v43  ;;  %4590 = vmatpush3.bf16.msra.mxu1 %v4818_v61 }
 0x592   :  { %4569 = vmatprep.subr.bf16.mxu0 %v4819_v41  ;;  %4591 = vmatprep.subr.bf16.mxu1 %v4820_v13 }
 0x595   :  { %4570 = vmatpush3.bf16.msra.mxu0 %v4821_v15  ;;  %4592 = vmatpush3.bf16.msra.mxu1 %v4822_v20 }
 0x596   :  { %4571 = vmatprep.subr.bf16.mxu0 %v4823_v2  ;;  %4593 = vmatprep.subr.bf16.mxu1 %v4824_v28 }
 0x599   :  { %4572 = vmatpush3.bf16.msra.mxu0 %v4825_v8  ;;  %4594 = vmatpush3.bf16.msra.mxu1 %v4826_v47 }
 0x59a   :  { %4573 = vmatprep.subr.bf16.mxu0 %v4827_v32  ;;  %4595 = vmatprep.subr.bf16.mxu1 %v4828_v48 }
 0x59d   :  { %4574 = vmatpush3.bf16.msra.mxu0 %v4829_v4  ;;  %4596 = vmatpush3.bf16.msra.mxu1 %v4830_v49 }
 0x59e   :  { %4575 = vmatprep.subr.bf16.mxu0 %v4831_v26  ;;  %4597 = vmatprep.subr.bf16.mxu1 %v4832_v9 }
 0x5a1   :  { %4576 = vmatpush3.bf16.msra.mxu0 %v4833_v16  ;;  %4598 = vmatpush3.bf16.msra.mxu1 %v4834_v46 }
 0x5a2   :  { %4577 = vmatprep.subr.bf16.mxu0 %v4835_v40  ;;  %4599 = vmatprep.subr.bf16.mxu1 %v4836_v50 }
 0x5a5   :  { %4578 = vmatpush3.bf16.msra.mxu0 %v4837_v53  ;;  %4600 = vmatpush3.bf16.msra.mxu1 %v4838_v54 }
 0x5a8   :  { %4052 = vmatmul.mubr.bf16.vlgmr.msra.gmra.mrb[20].mxu0 %v3416_v10  ;;  %4092 = vmatmul.mubr.bf16.vlgmr.msra.gmra.mrb[20].mxu1 %v3418_v55 }
 0x65b   :  { %v4535_v27 = vpop.f32.mrb[16].mxu0  ;;  %v4557_v56 = vpop.f32.mrb[16].mxu1 }
 0x65c   :  { %v4536_v0 = vpop.f32.mrb[17].mxu0  ;;  %v4558_v58 = vpop.f32.mrb[17].mxu1 }
 0x65d   :  { %v4537_v39 = vadd.f32 %v4536_v0, %v4535_v27  ;;  %v4559_v42 = vadd.f32 %v4558_v58, %v4557_v56  ;;  %v4538_v5 = vpop.f32.mrb[18].mxu0  ;;  %v4560_v21 = vpop.f32.mrb[18].mxu1 }
 0x65e   :  { %v4539_v45 = vpop.f32.mrb[19].mxu0  ;;  %v4561_v19 = vpop.f32.mrb[19].mxu1 }
 0x65f   :  { %v3974_v1 = vadd.f32 %v4537_v39, %v4451_v57 }
 0x661   :  { %v4014_v44 = vadd.f32 %v4559_v42, %v3974_v1 }
 0x67b   :  { %v4579_v25 = vpop.f32.mrb[20].mxu0  ;;  %v4601_v59 = vpop.f32.mrb[20].mxu1 }
 0x67c   :  { %v4580_v60 = vpop.f32.mrb[21].mxu0  ;;  %v4602_v62 = vpop.f32.mrb[21].mxu1 }
 0x67d   :  { %v4581_v63 = vadd.f32 %v4580_v60, %v4579_v25  ;;  %v4603_v6 = vadd.f32 %v4602_v62, %v4601_v59  ;;  %v4582_v7 = vpop.f32.mrb[22].mxu0  ;;  %v4604_v31 = vpop.f32.mrb[22].mxu1 }
 0x67e   :  { %v4583_v33 = vpop.f32.mrb[23].mxu0  ;;  %v4605_v36 = vpop.f32.mrb[23].mxu1 }
 0x67f   :  { %v4054_v11 = vadd.f32 %v4581_v63, %v4014_v44 }
 0x681   :  { %v4094_v12 = vadd.f32 %v4603_v6, %v4054_v11 }
 0x683   :  { %4867 = vtanh.f32 %v4094_v12 }
 0x68d   :  { %v4868_v34 = vpop.eup %4867 }
 0x68e   :  { %4100 = vst [vmem:[%s5644_s14] sm:$0xff] %v4868_v34 }
 0x68f   :  { %4105 = vsyncpa [#allocation3], 1 }
 0x690   :  { %4106 = vsyncpa [#allocation5], 1 }
 0x691   :  { %4107 = vsyncpa [#allocation8], 1 }
 0x692   :  { %4108 = vsyncpa [#allocation11], 1 }
 0x693   :  { %4109 = vsyncpa [#allocation14], 1 }
 0x694   :  { %4110 = vsyncpa [#allocation17], 1 }

</bundles_post_ra>
